<compile_context>
chip_gen: v5e
topology: v5e:2x2
jax: 0.10.0
libtpu: 0.0.40
codegen_flags: <defaults>
</compile_context>

<pallas_src>
from functools import partial

import jax
import jax.numpy as jnp
from jax.experimental import pallas as pl
from jax.experimental.pallas import tpu as pltpu


def _silu(z):
    return z * jax.nn.sigmoid(z)


# ---------------------------------------------------------------------------
# Fused DownB kernel.
#   xpair_ref : (2*tho*Wo, 2*c1)  image rows [2*ho0, 2*ho0+2*tho), col pairs
#               packed into lanes: row index = local_row*Wo + wo,
#               lanes = [x[row, 2*wo, :] | x[row, 2*wo+1, :]]
#   xhalo_ref : (Wo, 2*c1)        image row 2*ho0-1 (clamped, masked at top)
#   outputs   : (tho*Wo, c2) each (branch1, branch2), flattened (ho, wo) rows
# ---------------------------------------------------------------------------
def _downb_kernel(c1, c2, Wo, tho,
                  xpair_ref, xhalo_ref,
                  w1_ref, b1_ref, w2a_ref, b2a_ref,
                  wcr_ref, wl_ref, b2b_ref,
                  out1_ref, out2_ref):
    bf16 = jnp.bfloat16
    f32 = jnp.float32
    i = pl.program_id(1)                         # output-row tile, ho0 = i*tho

    # ---- branch2 stage 1: t = SiLU(1x1conv(x)) for the whole tile (packed) --
    xpair = xpair_ref[...]                                       # f32
    t_all = _silu(jnp.dot(xpair.astype(bf16), w2a_ref[...],
                          preferred_element_type=f32) + b2a_ref[...])
    # halo image row 2*ho0-1; contributes zero padding at the image top
    t_halo = _silu(jnp.dot(xhalo_ref[...].astype(bf16), w2a_ref[...],
                           preferred_element_type=f32) + b2a_ref[...])
    t_halo = t_halo * jnp.where(i == 0, 0.0, 1.0).astype(f32)

    # Exact one-row sublane shift as a 0/1 matmul: (S @ v)[wo] = v[wo-1], 0 at wo=0
    rows = jax.lax.broadcasted_iota(jnp.int32, (Wo, Wo), 0)
    cols = jax.lax.broadcasted_iota(jnp.int32, (Wo, Wo), 1)
    shift_mat = jnp.where(rows == cols + 1, 1.0, 0.0).astype(bf16)

    for j in range(tho):                         # static unroll over output rows
        r0, r1, r2 = (2 * j) * Wo, (2 * j + 1) * Wo, (2 * j + 2) * Wo

        # ---- branch1: 2x2 maxpool (pure VPU) + 1x1 conv + SiLU --------------
        x_even = xpair[r0:r1, :]                 # image row 2*(ho0+j)
        x_odd = xpair[r1:r2, :]                  # image row 2*(ho0+j)+1
        pooled = jnp.maximum(
            jnp.maximum(x_even[:, :c1], x_even[:, c1:]),
            jnp.maximum(x_odd[:, :c1], x_odd[:, c1:]))           # (Wo, c1) f32
        z1 = jnp.dot(pooled.astype(bf16), w1_ref[...],
                     preferred_element_type=f32) + b1_ref[...]
        out1_ref[j * Wo:(j + 1) * Wo, :] = _silu(z1).astype(out1_ref.dtype)

        # ---- branch2 stage 2: 3x3 stride-2 conv over t, f32 accumulation ----
        t_top = t_halo if j == 0 else t_all[(2 * j - 1) * Wo:r0, :]
        t_mid = t_all[r0:r1, :]
        t_bot = t_all[r1:r2, :]
        acc = jnp.zeros((Wo, c2), f32) + b2b_ref[...]
        for kh, t_r in enumerate((t_top, t_mid, t_bot)):
            # kw=1 (even lanes) and kw=2 (odd lanes) taps in one packed matmul
            acc = acc + jnp.dot(t_r.astype(bf16), wcr_ref[kh],
                                preferred_element_type=f32)
            # kw=0 tap: t[., 2*wo-1] = odd lanes shifted down one row (exact)
            t_left = jnp.dot(shift_mat, t_r[:, c2:].astype(bf16),
                             preferred_element_type=f32)
            acc = acc + jnp.dot(t_left.astype(bf16), wl_ref[kh],
                                preferred_element_type=f32)
        out2_ref[j * Wo:(j + 1) * Wo, :] = _silu(acc).astype(out2_ref.dtype)


def _pick_tho(Ho, Wo, max_unroll=8, target_rows=512):
    """Output rows per grid step: divides Ho, keeps >=2 row steps when possible,
    bounds the static unroll and keeps the input block around `target_rows`."""
    best = 1
    for cand in range(1, Ho + 1):
        if Ho % cand:
            continue
        if cand > max_unroll or 2 * cand * Wo > target_rows:
            break
        if Ho // cand >= 2 or Ho == 1:
            best = cand
    return best


# ---------------------------------------------------------------------------
# Wrapper (NCHW in / NCHW out, like the PyTorch module)
# ---------------------------------------------------------------------------
def downb_forward(x, y, params):
    N, c1, H, W = x.shape
    Ny, cy, Hy, Wy = y.shape
    c2 = params["w1"].shape[1]
    assert H % 2 == 0 and W % 2 == 0, "DownB expects even spatial dims"
    Ho, Wo = H // 2, W // 2
    assert (Ny, Hy, Wy) == (N, Ho, Wo)
    # TODO(synk): pad W so Wo is a multiple of 8 for arbitrary spatial sizes.
    assert Wo % 8 == 0, "kernel assumes Wo is a multiple of 8 (sublane tiling)"

    bf16 = jnp.bfloat16
    f32 = jnp.float32

    # NCHW -> NHWC (interface transpose) then pack adjacent column pairs into
    # lanes: (N, H, W, c1) -> (N, H*Wo, 2*c1).  Pure reshape, no extra copy.
    xh = jnp.transpose(x, (0, 2, 3, 1))
    xp2 = xh.reshape(N, H * Wo, 2 * c1)

    # ---- pack the (BN-folded) weights for the packed-lane layout -----------
    w1 = params["w1"].astype(f32)
    b1 = params["b1"].astype(f32).reshape(1, c2)
    w2a = params["w2a"].astype(f32)
    b2a = params["b2a"].astype(f32).reshape(1, c2)
    w2b = params["w2b"].astype(f32)                      # (3, 3, c2, c2) HWIO
    b2b = params["b2b"].astype(f32).reshape(1, c2)

    zeros = jnp.zeros_like(w2a)
    w2a_pair = jnp.concatenate(                           # blockdiag(w2a, w2a)
        [jnp.concatenate([w2a, zeros], axis=1),
         jnp.concatenate([zeros, w2a], axis=1)], axis=0).astype(bf16)  # (2c1,2c2)
    b2a_pair = jnp.concatenate([b2a, b2a], axis=1)                     # (1, 2c2)
    wcr = jnp.concatenate([w2b[:, 1], w2b[:, 2]], axis=1).astype(bf16)  # (3,2c2,c2)
    wl = w2b[:, 0].astype(bf16)                                         # (3,c2,c2)
    w1b = w1.astype(bf16)

    tho = _pick_tho(Ho, Wo)
    grid = (N, Ho // tho)
    rows_pair = 2 * tho * Wo
    rows_out = tho * Wo

    kernel = partial(_downb_kernel, c1, c2, Wo, tho)

    out1, out2 = pl.pallas_call(
        kernel,
        out_shape=(jax.ShapeDtypeStruct((N, Ho * Wo, c2), x.dtype),
                   jax.ShapeDtypeStruct((N, Ho * Wo, c2), x.dtype)),
        grid_spec=pltpu.PrefetchScalarGridSpec(
            num_scalar_prefetch=0,
            grid=grid,
            in_specs=[
                # current tile: image rows [2*ho0, 2*ho0 + 2*tho)
                pl.BlockSpec((None, rows_pair, 2 * c1), lambda n, i: (n, i, 0)),
                # halo: image row 2*ho0 - 1 (clamped; zero-masked in kernel)
                pl.BlockSpec((None, Wo, 2 * c1),
                             lambda n, i: (n, jnp.maximum(2 * i * tho - 1, 0), 0)),
                pl.BlockSpec((c1, c2), lambda n, i: (0, 0)),            # w1
                pl.BlockSpec((1, c2), lambda n, i: (0, 0)),             # b1
                pl.BlockSpec((2 * c1, 2 * c2), lambda n, i: (0, 0)),    # w2a packed
                pl.BlockSpec((1, 2 * c2), lambda n, i: (0, 0)),         # b2a packed
                pl.BlockSpec((3, 2 * c2, c2), lambda n, i: (0, 0, 0)),  # w2b kw=1,2
                pl.BlockSpec((3, c2, c2), lambda n, i: (0, 0, 0)),      # w2b kw=0
                pl.BlockSpec((1, c2), lambda n, i: (0, 0)),             # b2b
            ],
            out_specs=[
                pl.BlockSpec((None, rows_out, c2), lambda n, i: (n, i, 0)),
                pl.BlockSpec((None, rows_out, c2), lambda n, i: (n, i, 0)),
            ],
        ),
        compiler_params=pltpu.CompilerParams(
            dimension_semantics=("parallel", "parallel")),
    )(xp2, xp2, w1b, b1, w2a_pair, b2a_pair, wcr, wl, b2b)

    # channel concat with y + back to NCHW (left to XLA, fuses with transpose)
    yh = jnp.transpose(y, (0, 2, 3, 1)).reshape(N, Ho * Wo, cy).astype(out1.dtype)
    out = jnp.concatenate([out1, out2, yh], axis=-1)
    return out.reshape(N, Ho, Wo, 2 * c2 + cy).transpose(0, 3, 1, 2)


# ---------------------------------------------------------------------------
# Deterministic parameter init with eval-mode BatchNorm folded into the convs
# ---------------------------------------------------------------------------
def init_params(key, c1, c2, eps=1e-5):
    ks = jax.random.split(key, 15)

    def bn_fold(i):
        gamma = 1.0 + 0.1 * jax.random.normal(ks[i], (c2,), jnp.float32)
        beta = 0.1 * jax.random.normal(ks[i + 1], (c2,), jnp.float32)
        mean = 0.1 * jax.random.normal(ks[i + 2], (c2,), jnp.float32)
        var = 1.0 + 0.1 * jnp.abs(jax.random.normal(ks[i + 3], (c2,), jnp.float32))
        scale = gamma * jax.lax.rsqrt(var + eps)
        bias = beta - mean * scale
        return scale, bias

    w1 = 0.3 * jax.random.normal(ks[12], (c1, c2), jnp.float32)          # 1x1, IO
    w2a = 0.3 * jax.random.normal(ks[13], (c1, c2), jnp.float32)         # 1x1, IO
    w2b = 0.2 * jax.random.normal(ks[14], (3, 3, c2, c2), jnp.float32)   # HWIO

    s1, b1 = bn_fold(0)
    s2a, b2a = bn_fold(4)
    s2b, b2b = bn_fold(8)

    return dict(
        w1=w1 * s1[None, :], b1=b1.reshape(1, c2),
        w2a=w2a * s2a[None, :], b2a=b2a.reshape(1, c2),
        w2b=w2b * s2b[None, None, None, :], b2b=b2b.reshape(1, c2),
    )


# ---------------------------------------------------------------------------
# Pure-JAX references (XLA convs) for correctness checks
# ---------------------------------------------------------------------------
def ref_forward(x, y, p, bf16_operands=False):
    N, c1, H, W = x.shape
    c2 = p["w1"].shape[1]
    xh = jnp.transpose(x, (0, 2, 3, 1))
    yh = jnp.transpose(y, (0, 2, 3, 1))
    dn = ("NHWC", "HWIO", "NHWC")

    def prep(a):
        return a.astype(jnp.bfloat16) if bf16_operands else a

    def conv(a, w, stride, padding):
        return jax.lax.conv_general_dilated(
            prep(a), prep(w), stride, padding, dimension_numbers=dn,
            preferred_element_type=jnp.float32)

    pool = jax.lax.reduce_window(xh, -jnp.inf, jax.lax.max,
                                 (1, 2, 2, 1), (1, 2, 2, 1), "VALID")
    x1 = _silu(conv(pool, p["w1"].reshape(1, 1, c1, c2), (1, 1), "VALID")
               + p["b1"].reshape(1, 1, 1, c2))
    t = _silu(conv(xh, p["w2a"].reshape(1, 1, c1, c2), (1, 1), "VALID")
              + p["b2a"].reshape(1, 1, 1, c2))
    x2 = _silu(conv(t, p["w2b"], (2, 2), ((1, 1), (1, 1)))
               + p["b2b"].reshape(1, 1, 1, c2))
    out = jnp.concatenate([x1, x2, yh.astype(x1.dtype)], axis=-1)
    return jnp.transpose(out, (0, 3, 1, 2))


if __name__ == "__main__":
    key = jax.random.PRNGKey(0)
    kx, ky, kp = jax.random.split(key, 3)

    N, c1, H, W = 2, 4, 16, 16
    c2, cy = 8, 4

    x = jax.random.normal(kx, (N, c1, H, W), jnp.float32)
    y = jax.random.normal(ky, (N, cy, H // 2, W // 2), jnp.float32)
    params = init_params(kp, c1, c2)

    out = jax.block_until_ready(downb_forward(x, y, params))
    assert out.shape == (N, 2 * c2 + cy, H // 2, W // 2)

    # Check against an XLA reference using the same bf16-operand / f32-accum
    # matmul policy as the kernel (should match to accumulation-order noise).
    ref_bf = ref_forward(x, y, params, bf16_operands=True)
    assert jnp.allclose(out, ref_bf, atol=2e-3, rtol=2e-3), \
        float(jnp.max(jnp.abs(out - ref_bf)))

    # Sanity check against the pure-f32 reference (bf16 rounding tolerance).
    ref_f32 = ref_forward(x, y, params)
    assert jnp.allclose(out, ref_f32, atol=6e-2, rtol=6e-2), \
        float(jnp.max(jnp.abs(out - ref_f32)))

    print("KERNEL_OK")
</pallas_src>

<mosaic_0001>
module attributes {stable_mosaic.version = 11 : i64} {
  func.func @_downb_kernel(%arg0: i32, %arg1: i32, %arg2: memref<1x64x8xf32, #tpu.memory_space<vmem>>, %arg3: memref<1x8x8xf32, #tpu.memory_space<vmem>>, %arg4: memref<4x8xbf16, #tpu.memory_space<vmem>>, %arg5: memref<1x8xf32, #tpu.memory_space<vmem>>, %arg6: memref<8x16xbf16, #tpu.memory_space<vmem>>, %arg7: memref<1x16xf32, #tpu.memory_space<vmem>>, %arg8: memref<3x16x8xbf16, #tpu.memory_space<vmem>>, %arg9: memref<3x8x8xbf16, #tpu.memory_space<vmem>>, %arg10: memref<1x8xf32, #tpu.memory_space<vmem>>, %arg11: memref<1x32x8xf32, #tpu.memory_space<vmem>>, %arg12: memref<1x32x8xf32, #tpu.memory_space<vmem>>) attributes {dimension_semantics = [#tpu.dimension_semantics<parallel>, #tpu.dimension_semantics<parallel>], iteration_bounds = array<i64: 2, 2>, scalar_prefetch = 0 : i64, scratch_operands = 0 : i64, tpu.core_type = #tpu.core_type<tc>, window_params = [{transform_indices = @transform_0, window_bounds = array<i64: 1, 64, 8>}, {transform_indices = @transform_1, window_bounds = array<i64: 1, 8, 8>}, {pipeline_mode = #tpu.pipeline_mode<synchronous>, transform_indices = @transform_2, window_bounds = array<i64: 4, 8>}, {pipeline_mode = #tpu.pipeline_mode<synchronous>, transform_indices = @transform_3, window_bounds = array<i64: 1, 8>}, {pipeline_mode = #tpu.pipeline_mode<synchronous>, transform_indices = @transform_4, window_bounds = array<i64: 8, 16>}, {pipeline_mode = #tpu.pipeline_mode<synchronous>, transform_indices = @transform_5, window_bounds = array<i64: 1, 16>}, {pipeline_mode = #tpu.pipeline_mode<synchronous>, transform_indices = @transform_6, window_bounds = array<i64: 3, 16, 8>}, {pipeline_mode = #tpu.pipeline_mode<synchronous>, transform_indices = @transform_7, window_bounds = array<i64: 3, 8, 8>}, {pipeline_mode = #tpu.pipeline_mode<synchronous>, transform_indices = @transform_8, window_bounds = array<i64: 1, 8>}, {transform_indices = @transform_9, window_bounds = array<i64: 1, 32, 8>}, {transform_indices = @transform_10, window_bounds = array<i64: 1, 32, 8>}]} {
    %c0 = arith.constant 0 : index
    %c0_0 = arith.constant 0 : index
    %c0_1 = arith.constant 0 : index
    %0 = vector.load %arg2[%c0, %c0_0, %c0_1] : memref<1x64x8xf32, #tpu.memory_space<vmem>>, vector<1x64x8xf32>
    %1 = vector.shape_cast %0 : vector<1x64x8xf32> to vector<64x8xf32>
    %2 = arith.truncf %1 : vector<64x8xf32> to vector<64x8xbf16>
    %c0_2 = arith.constant 0 : index
    %c0_3 = arith.constant 0 : index
    %3 = vector.load %arg6[%c0_2, %c0_3] : memref<8x16xbf16, #tpu.memory_space<vmem>>, vector<8x16xbf16>
    %cst = arith.constant dense<0.000000e+00> : vector<64x16xf32>
    %4 = tpu.matmul %2, %3, %cst {dimension_numbers = #tpu.dot_dimension_numbers<[1], [0], [0], [1], [0, 0, 1, 1], [], []>} : vector<64x8xbf16>, vector<8x16xbf16>, vector<64x16xf32> -> vector<64x16xf32>
    %c0_4 = arith.constant 0 : index
    %c0_5 = arith.constant 0 : index
    %5 = vector.load %arg7[%c0_4, %c0_5] : memref<1x16xf32, #tpu.memory_space<vmem>>, vector<1x16xf32>
    %6 = vector.broadcast %5 : vector<1x16xf32> to vector<64x16xf32>
    %7 = arith.addf %4, %6 : vector<64x16xf32>
    %8 = arith.negf %7 : vector<64x16xf32>
    %9 = math.exp %8 : vector<64x16xf32>
    %cst_6 = arith.constant 1.000000e+00 : f32
    %10 = vector.broadcast %cst_6 : f32 to vector<64x16xf32>
    %11 = arith.addf %10, %9 : vector<64x16xf32>
    %12 = arith.divf %10, %11 : vector<64x16xf32>
    %13 = arith.mulf %7, %12 : vector<64x16xf32>
    %c0_7 = arith.constant 0 : index
    %c0_8 = arith.constant 0 : index
    %c0_9 = arith.constant 0 : index
    %14 = vector.load %arg3[%c0_7, %c0_8, %c0_9] : memref<1x8x8xf32, #tpu.memory_space<vmem>>, vector<1x8x8xf32>
    %15 = vector.shape_cast %14 : vector<1x8x8xf32> to vector<8x8xf32>
    %16 = arith.truncf %15 : vector<8x8xf32> to vector<8x8xbf16>
    %c0_10 = arith.constant 0 : index
    %c0_11 = arith.constant 0 : index
    %17 = vector.load %arg6[%c0_10, %c0_11] : memref<8x16xbf16, #tpu.memory_space<vmem>>, vector<8x16xbf16>
    %cst_12 = arith.constant dense<0.000000e+00> : vector<8x16xf32>
    %18 = tpu.matmul %16, %17, %cst_12 {dimension_numbers = #tpu.dot_dimension_numbers<[1], [0], [0], [1], [0, 0, 1, 1], [], []>} : vector<8x8xbf16>, vector<8x16xbf16>, vector<8x16xf32> -> vector<8x16xf32>
    %c0_13 = arith.constant 0 : index
    %c0_14 = arith.constant 0 : index
    %19 = vector.load %arg7[%c0_13, %c0_14] : memref<1x16xf32, #tpu.memory_space<vmem>>, vector<1x16xf32>
    %20 = vector.broadcast %19 : vector<1x16xf32> to vector<8x16xf32>
    %21 = arith.addf %18, %20 : vector<8x16xf32>
    %22 = arith.negf %21 : vector<8x16xf32>
    %23 = math.exp %22 : vector<8x16xf32>
    %cst_15 = arith.constant 1.000000e+00 : f32
    %24 = vector.broadcast %cst_15 : f32 to vector<8x16xf32>
    %25 = arith.addf %24, %23 : vector<8x16xf32>
    %26 = arith.divf %24, %25 : vector<8x16xf32>
    %27 = arith.mulf %21, %26 : vector<8x16xf32>
    %c0_i32 = arith.constant 0 : i32
    %28 = arith.cmpi eq, %arg1, %c0_i32 : i32
    %cst_16 = arith.constant 0.000000e+00 : f32
    %cst_17 = arith.constant 1.000000e+00 : f32
    %29 = arith.select %28, %cst_16, %cst_17 : f32
    %30 = vector.broadcast %29 : f32 to vector<8x16xf32>
    %31 = arith.mulf %27, %30 : vector<8x16xf32>
    %32 = tpu.iota {dimensions = array<i32: 0>} : vector<8x8xi32>
    %33 = tpu.iota {dimensions = array<i32: 1>} : vector<8x8xi32>
    %c1_i32 = arith.constant 1 : i32
    %34 = vector.broadcast %c1_i32 : i32 to vector<8x8xi32>
    %35 = arith.addi %33, %34 : vector<8x8xi32>
    %36 = arith.cmpi eq, %32, %35 : vector<8x8xi32>
    %cst_18 = arith.constant 1.000000e+00 : f32
    %cst_19 = arith.constant 0.000000e+00 : f32
    %37 = vector.broadcast %cst_18 : f32 to vector<8x8xf32>
    %38 = vector.broadcast %cst_19 : f32 to vector<8x8xf32>
    %39 = arith.select %36, %37, %38 : vector<8x8xi1>, vector<8x8xf32>
    %40 = arith.truncf %39 : vector<8x8xf32> to vector<8x8xbf16>
    %41 = vector.extract_strided_slice %1 {offsets = [0, 0], sizes = [8, 8], strides = [1, 1]} : vector<64x8xf32> to vector<8x8xf32>
    %42 = vector.extract_strided_slice %1 {offsets = [8, 0], sizes = [8, 8], strides = [1, 1]} : vector<64x8xf32> to vector<8x8xf32>
    %43 = vector.extract_strided_slice %41 {offsets = [0, 0], sizes = [8, 4], strides = [1, 1]} : vector<8x8xf32> to vector<8x4xf32>
    %44 = vector.extract_strided_slice %41 {offsets = [0, 4], sizes = [8, 4], strides = [1, 1]} : vector<8x8xf32> to vector<8x4xf32>
    %45 = arith.maximumf %43, %44 : vector<8x4xf32>
    %46 = vector.extract_strided_slice %42 {offsets = [0, 0], sizes = [8, 4], strides = [1, 1]} : vector<8x8xf32> to vector<8x4xf32>
    %47 = vector.extract_strided_slice %42 {offsets = [0, 4], sizes = [8, 4], strides = [1, 1]} : vector<8x8xf32> to vector<8x4xf32>
    %48 = arith.maximumf %46, %47 : vector<8x4xf32>
    %49 = arith.maximumf %45, %48 : vector<8x4xf32>
    %50 = arith.truncf %49 : vector<8x4xf32> to vector<8x4xbf16>
    %c0_20 = arith.constant 0 : index
    %c0_21 = arith.constant 0 : index
    %51 = vector.load %arg4[%c0_20, %c0_21] : memref<4x8xbf16, #tpu.memory_space<vmem>>, vector<4x8xbf16>
    %cst_22 = arith.constant dense<0.000000e+00> : vector<8x8xf32>
    %52 = tpu.matmul %50, %51, %cst_22 {dimension_numbers = #tpu.dot_dimension_numbers<[1], [0], [0], [1], [0, 0, 1, 1], [], []>} : vector<8x4xbf16>, vector<4x8xbf16>, vector<8x8xf32> -> vector<8x8xf32>
    %c0_23 = arith.constant 0 : index
    %c0_24 = arith.constant 0 : index
    %53 = vector.load %arg5[%c0_23, %c0_24] : memref<1x8xf32, #tpu.memory_space<vmem>>, vector<1x8xf32>
    %54 = vector.broadcast %53 : vector<1x8xf32> to vector<8x8xf32>
    %55 = arith.addf %52, %54 : vector<8x8xf32>
    %56 = arith.negf %55 : vector<8x8xf32>
    %57 = math.exp %56 : vector<8x8xf32>
    %cst_25 = arith.constant 1.000000e+00 : f32
    %58 = vector.broadcast %cst_25 : f32 to vector<8x8xf32>
    %59 = arith.addf %58, %57 : vector<8x8xf32>
    %60 = arith.divf %58, %59 : vector<8x8xf32>
    %61 = arith.mulf %55, %60 : vector<8x8xf32>
    %c0_26 = arith.constant 0 : index
    %c0_27 = arith.constant 0 : index
    %c0_28 = arith.constant 0 : index
    %62 = vector.load %arg11[%c0_26, %c0_27, %c0_28] : memref<1x32x8xf32, #tpu.memory_space<vmem>>, vector<1x8x8xf32>
    %63 = vector.shape_cast %62 : vector<1x8x8xf32> to vector<8x8xf32>
    %64 = vector.shape_cast %61 : vector<8x8xf32> to vector<1x8x8xf32>
    tpu.vector_store %arg11[%c0_26, %c0_27, %c0_28], %64 {strides = array<i32>} : memref<1x32x8xf32, #tpu.memory_space<vmem>>, vector<1x8x8xf32>,
    %65 = vector.extract_strided_slice %13 {offsets = [0, 0], sizes = [8, 16], strides = [1, 1]} : vector<64x16xf32> to vector<8x16xf32>
    %66 = vector.extract_strided_slice %13 {offsets = [8, 0], sizes = [8, 16], strides = [1, 1]} : vector<64x16xf32> to vector<8x16xf32>
    %cst_29 = arith.constant 0.000000e+00 : f32
    %67 = vector.broadcast %cst_29 : f32 to vector<8x8xf32>
    %c0_30 = arith.constant 0 : index
    %c0_31 = arith.constant 0 : index
    %68 = vector.load %arg10[%c0_30, %c0_31] : memref<1x8xf32, #tpu.memory_space<vmem>>, vector<1x8xf32>
    %69 = vector.broadcast %68 : vector<1x8xf32> to vector<8x8xf32>
    %70 = arith.addf %67, %69 : vector<8x8xf32>
    %71 = arith.truncf %31 : vector<8x16xf32> to vector<8x16xbf16>
    %c0_32 = arith.constant 0 : index
    %c0_33 = arith.constant 0 : index
    %c0_34 = arith.constant 0 : index
    %72 = vector.load %arg8[%c0_32, %c0_33, %c0_34] : memref<3x16x8xbf16, #tpu.memory_space<vmem>>, vector<1x16x8xbf16>
    %73 = vector.shape_cast %72 : vector<1x16x8xbf16> to vector<16x8xbf16>
    %cst_35 = arith.constant dense<0.000000e+00> : vector<8x8xf32>
    %74 = tpu.matmul %71, %73, %cst_35 {dimension_numbers = #tpu.dot_dimension_numbers<[1], [0], [0], [1], [0, 0, 1, 1], [], []>} : vector<8x16xbf16>, vector<16x8xbf16>, vector<8x8xf32> -> vector<8x8xf32>
    %75 = arith.addf %70, %74 : vector<8x8xf32>
    %76 = vector.extract_strided_slice %31 {offsets = [0, 8], sizes = [8, 8], strides = [1, 1]} : vector<8x16xf32> to vector<8x8xf32>
    %77 = arith.truncf %76 : vector<8x8xf32> to vector<8x8xbf16>
    %cst_36 = arith.constant dense<0.000000e+00> : vector<8x8xf32>
    %78 = tpu.matmul %40, %77, %cst_36 {dimension_numbers = #tpu.dot_dimension_numbers<[1], [0], [0], [1], [0, 0, 1, 1], [], []>} : vector<8x8xbf16>, vector<8x8xbf16>, vector<8x8xf32> -> vector<8x8xf32>
    %79 = arith.truncf %78 : vector<8x8xf32> to vector<8x8xbf16>
    %c0_37 = arith.constant 0 : index
    %c0_38 = arith.constant 0 : index
    %c0_39 = arith.constant 0 : index
    %80 = vector.load %arg9[%c0_37, %c0_38, %c0_39] : memref<3x8x8xbf16, #tpu.memory_space<vmem>>, vector<1x8x8xbf16>
    %81 = vector.shape_cast %80 : vector<1x8x8xbf16> to vector<8x8xbf16>
    %cst_40 = arith.constant dense<0.000000e+00> : vector<8x8xf32>
    %82 = tpu.matmul %79, %81, %cst_40 {dimension_numbers = #tpu.dot_dimension_numbers<[1], [0], [0], [1], [0, 0, 1, 1], [], []>} : vector<8x8xbf16>, vector<8x8xbf16>, vector<8x8xf32> -> vector<8x8xf32>
    %83 = arith.addf %75, %82 : vector<8x8xf32>
    %84 = arith.truncf %65 : vector<8x16xf32> to vector<8x16xbf16>
    %c1 = arith.constant 1 : index
    %c0_41 = arith.constant 0 : index
    %c0_42 = arith.constant 0 : index
    %85 = vector.load %arg8[%c1, %c0_41, %c0_42] : memref<3x16x8xbf16, #tpu.memory_space<vmem>>, vector<1x16x8xbf16>
    %86 = vector.shape_cast %85 : vector<1x16x8xbf16> to vector<16x8xbf16>
    %cst_43 = arith.constant dense<0.000000e+00> : vector<8x8xf32>
    %87 = tpu.matmul %84, %86, %cst_43 {dimension_numbers = #tpu.dot_dimension_numbers<[1], [0], [0], [1], [0, 0, 1, 1], [], []>} : vector<8x16xbf16>, vector<16x8xbf16>, vector<8x8xf32> -> vector<8x8xf32>
    %88 = arith.addf %83, %87 : vector<8x8xf32>
    %89 = vector.extract_strided_slice %65 {offsets = [0, 8], sizes = [8, 8], strides = [1, 1]} : vector<8x16xf32> to vector<8x8xf32>
    %90 = arith.truncf %89 : vector<8x8xf32> to vector<8x8xbf16>
    %cst_44 = arith.constant dense<0.000000e+00> : vector<8x8xf32>
    %91 = tpu.matmul %40, %90, %cst_44 {dimension_numbers = #tpu.dot_dimension_numbers<[1], [0], [0], [1], [0, 0, 1, 1], [], []>} : vector<8x8xbf16>, vector<8x8xbf16>, vector<8x8xf32> -> vector<8x8xf32>
    %92 = arith.truncf %91 : vector<8x8xf32> to vector<8x8xbf16>
    %c1_45 = arith.constant 1 : index
    %c0_46 = arith.constant 0 : index
    %c0_47 = arith.constant 0 : index
    %93 = vector.load %arg9[%c1_45, %c0_46, %c0_47] : memref<3x8x8xbf16, #tpu.memory_space<vmem>>, vector<1x8x8xbf16>
    %94 = vector.shape_cast %93 : vector<1x8x8xbf16> to vector<8x8xbf16>
    %cst_48 = arith.constant dense<0.000000e+00> : vector<8x8xf32>
    %95 = tpu.matmul %92, %94, %cst_48 {dimension_numbers = #tpu.dot_dimension_numbers<[1], [0], [0], [1], [0, 0, 1, 1], [], []>} : vector<8x8xbf16>, vector<8x8xbf16>, vector<8x8xf32> -> vector<8x8xf32>
    %96 = arith.addf %88, %95 : vector<8x8xf32>
    %97 = arith.truncf %66 : vector<8x16xf32> to vector<8x16xbf16>
    %c2 = arith.constant 2 : index
    %c0_49 = arith.constant 0 : index
    %c0_50 = arith.constant 0 : index
    %98 = vector.load %arg8[%c2, %c0_49, %c0_50] : memref<3x16x8xbf16, #tpu.memory_space<vmem>>, vector<1x16x8xbf16>
    %99 = vector.shape_cast %98 : vector<1x16x8xbf16> to vector<16x8xbf16>
    %cst_51 = arith.constant dense<0.000000e+00> : vector<8x8xf32>
    %100 = tpu.matmul %97, %99, %cst_51 {dimension_numbers = #tpu.dot_dimension_numbers<[1], [0], [0], [1], [0, 0, 1, 1], [], []>} : vector<8x16xbf16>, vector<16x8xbf16>, vector<8x8xf32> -> vector<8x8xf32>
    %101 = arith.addf %96, %100 : vector<8x8xf32>
    %102 = vector.extract_strided_slice %66 {offsets = [0, 8], sizes = [8, 8], strides = [1, 1]} : vector<8x16xf32> to vector<8x8xf32>
    %103 = arith.truncf %102 : vector<8x8xf32> to vector<8x8xbf16>
    %cst_52 = arith.constant dense<0.000000e+00> : vector<8x8xf32>
    %104 = tpu.matmul %40, %103, %cst_52 {dimension_numbers = #tpu.dot_dimension_numbers<[1], [0], [0], [1], [0, 0, 1, 1], [], []>} : vector<8x8xbf16>, vector<8x8xbf16>, vector<8x8xf32> -> vector<8x8xf32>
    %105 = arith.truncf %104 : vector<8x8xf32> to vector<8x8xbf16>
    %c2_53 = arith.constant 2 : index
    %c0_54 = arith.constant 0 : index
    %c0_55 = arith.constant 0 : index
    %106 = vector.load %arg9[%c2_53, %c0_54, %c0_55] : memref<3x8x8xbf16, #tpu.memory_space<vmem>>, vector<1x8x8xbf16>
    %107 = vector.shape_cast %106 : vector<1x8x8xbf16> to vector<8x8xbf16>
    %cst_56 = arith.constant dense<0.000000e+00> : vector<8x8xf32>
    %108 = tpu.matmul %105, %107, %cst_56 {dimension_numbers = #tpu.dot_dimension_numbers<[1], [0], [0], [1], [0, 0, 1, 1], [], []>} : vector<8x8xbf16>, vector<8x8xbf16>, vector<8x8xf32> -> vector<8x8xf32>
    %109 = arith.addf %101, %108 : vector<8x8xf32>
    %110 = arith.negf %109 : vector<8x8xf32>
    %111 = math.exp %110 : vector<8x8xf32>
    %cst_57 = arith.constant 1.000000e+00 : f32
    %112 = vector.broadcast %cst_57 : f32 to vector<8x8xf32>
    %113 = arith.addf %112, %111 : vector<8x8xf32>
    %114 = arith.divf %112, %113 : vector<8x8xf32>
    %115 = arith.mulf %109, %114 : vector<8x8xf32>
    %c0_58 = arith.constant 0 : index
    %c0_59 = arith.constant 0 : index
    %c0_60 = arith.constant 0 : index
    %116 = vector.load %arg12[%c0_58, %c0_59, %c0_60] : memref<1x32x8xf32, #tpu.memory_space<vmem>>, vector<1x8x8xf32>
    %117 = vector.shape_cast %116 : vector<1x8x8xf32> to vector<8x8xf32>
    %118 = vector.shape_cast %115 : vector<8x8xf32> to vector<1x8x8xf32>
    tpu.vector_store %arg12[%c0_58, %c0_59, %c0_60], %118 {strides = array<i32>} : memref<1x32x8xf32, #tpu.memory_space<vmem>>, vector<1x8x8xf32>,
    %119 = vector.extract_strided_slice %1 {offsets = [16, 0], sizes = [8, 8], strides = [1, 1]} : vector<64x8xf32> to vector<8x8xf32>
    %120 = vector.extract_strided_slice %1 {offsets = [24, 0], sizes = [8, 8], strides = [1, 1]} : vector<64x8xf32> to vector<8x8xf32>
    %121 = vector.extract_strided_slice %119 {offsets = [0, 0], sizes = [8, 4], strides = [1, 1]} : vector<8x8xf32> to vector<8x4xf32>
    %122 = vector.extract_strided_slice %119 {offsets = [0, 4], sizes = [8, 4], strides = [1, 1]} : vector<8x8xf32> to vector<8x4xf32>
    %123 = arith.maximumf %121, %122 : vector<8x4xf32>
    %124 = vector.extract_strided_slice %120 {offsets = [0, 0], sizes = [8, 4], strides = [1, 1]} : vector<8x8xf32> to vector<8x4xf32>
    %125 = vector.extract_strided_slice %120 {offsets = [0, 4], sizes = [8, 4], strides = [1, 1]} : vector<8x8xf32> to vector<8x4xf32>
    %126 = arith.maximumf %124, %125 : vector<8x4xf32>
    %127 = arith.maximumf %123, %126 : vector<8x4xf32>
    %128 = arith.truncf %127 : vector<8x4xf32> to vector<8x4xbf16>
    %c0_61 = arith.constant 0 : index
    %c0_62 = arith.constant 0 : index
    %129 = vector.load %arg4[%c0_61, %c0_62] : memref<4x8xbf16, #tpu.memory_space<vmem>>, vector<4x8xbf16>
    %cst_63 = arith.constant dense<0.000000e+00> : vector<8x8xf32>
    %130 = tpu.matmul %128, %129, %cst_63 {dimension_numbers = #tpu.dot_dimension_numbers<[1], [0], [0], [1], [0, 0, 1, 1], [], []>} : vector<8x4xbf16>, vector<4x8xbf16>, vector<8x8xf32> -> vector<8x8xf32>
    %c0_64 = arith.constant 0 : index
    %c0_65 = arith.constant 0 : index
    %131 = vector.load %arg5[%c0_64, %c0_65] : memref<1x8xf32, #tpu.memory_space<vmem>>, vector<1x8xf32>
    %132 = vector.broadcast %131 : vector<1x8xf32> to vector<8x8xf32>
    %133 = arith.addf %130, %132 : vector<8x8xf32>
    %134 = arith.negf %133 : vector<8x8xf32>
    %135 = math.exp %134 : vector<8x8xf32>
    %cst_66 = arith.constant 1.000000e+00 : f32
    %136 = vector.broadcast %cst_66 : f32 to vector<8x8xf32>
    %137 = arith.addf %136, %135 : vector<8x8xf32>
    %138 = arith.divf %136, %137 : vector<8x8xf32>
    %139 = arith.mulf %133, %138 : vector<8x8xf32>
    %c0_67 = arith.constant 0 : index
    %c8 = arith.constant 8 : index
    %c0_68 = arith.constant 0 : index
    %140 = vector.load %arg11[%c0_67, %c8, %c0_68] : memref<1x32x8xf32, #tpu.memory_space<vmem>>, vector<1x8x8xf32>
    %141 = vector.shape_cast %140 : vector<1x8x8xf32> to vector<8x8xf32>
    %142 = vector.shape_cast %139 : vector<8x8xf32> to vector<1x8x8xf32>
    tpu.vector_store %arg11[%c0_67, %c8, %c0_68], %142 {strides = array<i32>} : memref<1x32x8xf32, #tpu.memory_space<vmem>>, vector<1x8x8xf32>,
    %143 = vector.extract_strided_slice %13 {offsets = [8, 0], sizes = [8, 16], strides = [1, 1]} : vector<64x16xf32> to vector<8x16xf32>
    %144 = vector.extract_strided_slice %13 {offsets = [16, 0], sizes = [8, 16], strides = [1, 1]} : vector<64x16xf32> to vector<8x16xf32>
    %145 = vector.extract_strided_slice %13 {offsets = [24, 0], sizes = [8, 16], strides = [1, 1]} : vector<64x16xf32> to vector<8x16xf32>
    %cst_69 = arith.constant 0.000000e+00 : f32
    %146 = vector.broadcast %cst_69 : f32 to vector<8x8xf32>
    %c0_70 = arith.constant 0 : index
    %c0_71 = arith.constant 0 : index
    %147 = vector.load %arg10[%c0_70, %c0_71] : memref<1x8xf32, #tpu.memory_space<vmem>>, vector<1x8xf32>
    %148 = vector.broadcast %147 : vector<1x8xf32> to vector<8x8xf32>
    %149 = arith.addf %146, %148 : vector<8x8xf32>
    %150 = arith.truncf %143 : vector<8x16xf32> to vector<8x16xbf16>
    %c0_72 = arith.constant 0 : index
    %c0_73 = arith.constant 0 : index
    %c0_74 = arith.constant 0 : index
    %151 = vector.load %arg8[%c0_72, %c0_73, %c0_74] : memref<3x16x8xbf16, #tpu.memory_space<vmem>>, vector<1x16x8xbf16>
    %152 = vector.shape_cast %151 : vector<1x16x8xbf16> to vector<16x8xbf16>
    %cst_75 = arith.constant dense<0.000000e+00> : vector<8x8xf32>
    %153 = tpu.matmul %150, %152, %cst_75 {dimension_numbers = #tpu.dot_dimension_numbers<[1], [0], [0], [1], [0, 0, 1, 1], [], []>} : vector<8x16xbf16>, vector<16x8xbf16>, vector<8x8xf32> -> vector<8x8xf32>
    %154 = arith.addf %149, %153 : vector<8x8xf32>
    %155 = vector.extract_strided_slice %143 {offsets = [0, 8], sizes = [8, 8], strides = [1, 1]} : vector<8x16xf32> to vector<8x8xf32>
    %156 = arith.truncf %155 : vector<8x8xf32> to vector<8x8xbf16>
    %cst_76 = arith.constant dense<0.000000e+00> : vector<8x8xf32>
    %157 = tpu.matmul %40, %156, %cst_76 {dimension_numbers = #tpu.dot_dimension_numbers<[1], [0], [0], [1], [0, 0, 1, 1], [], []>} : vector<8x8xbf16>, vector<8x8xbf16>, vector<8x8xf32> -> vector<8x8xf32>
    %158 = arith.truncf %157 : vector<8x8xf32> to vector<8x8xbf16>
    %c0_77 = arith.constant 0 : index
    %c0_78 = arith.constant 0 : index
    %c0_79 = arith.constant 0 : index
    %159 = vector.load %arg9[%c0_77, %c0_78, %c0_79] : memref<3x8x8xbf16, #tpu.memory_space<vmem>>, vector<1x8x8xbf16>
    %160 = vector.shape_cast %159 : vector<1x8x8xbf16> to vector<8x8xbf16>
    %cst_80 = arith.constant dense<0.000000e+00> : vector<8x8xf32>
    %161 = tpu.matmul %158, %160, %cst_80 {dimension_numbers = #tpu.dot_dimension_numbers<[1], [0], [0], [1], [0, 0, 1, 1], [], []>} : vector<8x8xbf16>, vector<8x8xbf16>, vector<8x8xf32> -> vector<8x8xf32>
    %162 = arith.addf %154, %161 : vector<8x8xf32>
    %163 = arith.truncf %144 : vector<8x16xf32> to vector<8x16xbf16>
    %c1_81 = arith.constant 1 : index
    %c0_82 = arith.constant 0 : index
    %c0_83 = arith.constant 0 : index
    %164 = vector.load %arg8[%c1_81, %c0_82, %c0_83] : memref<3x16x8xbf16, #tpu.memory_space<vmem>>, vector<1x16x8xbf16>
    %165 = vector.shape_cast %164 : vector<1x16x8xbf16> to vector<16x8xbf16>
    %cst_84 = arith.constant dense<0.000000e+00> : vector<8x8xf32>
    %166 = tpu.matmul %163, %165, %cst_84 {dimension_numbers = #tpu.dot_dimension_numbers<[1], [0], [0], [1], [0, 0, 1, 1], [], []>} : vector<8x16xbf16>, vector<16x8xbf16>, vector<8x8xf32> -> vector<8x8xf32>
    %167 = arith.addf %162, %166 : vector<8x8xf32>
    %168 = vector.extract_strided_slice %144 {offsets = [0, 8], sizes = [8, 8], strides = [1, 1]} : vector<8x16xf32> to vector<8x8xf32>
    %169 = arith.truncf %168 : vector<8x8xf32> to vector<8x8xbf16>
    %cst_85 = arith.constant dense<0.000000e+00> : vector<8x8xf32>
    %170 = tpu.matmul %40, %169, %cst_85 {dimension_numbers = #tpu.dot_dimension_numbers<[1], [0], [0], [1], [0, 0, 1, 1], [], []>} : vector<8x8xbf16>, vector<8x8xbf16>, vector<8x8xf32> -> vector<8x8xf32>
    %171 = arith.truncf %170 : vector<8x8xf32> to vector<8x8xbf16>
    %c1_86 = arith.constant 1 : index
    %c0_87 = arith.constant 0 : index
    %c0_88 = arith.constant 0 : index
    %172 = vector.load %arg9[%c1_86, %c0_87, %c0_88] : memref<3x8x8xbf16, #tpu.memory_space<vmem>>, vector<1x8x8xbf16>
    %173 = vector.shape_cast %172 : vector<1x8x8xbf16> to vector<8x8xbf16>
    %cst_89 = arith.constant dense<0.000000e+00> : vector<8x8xf32>
    %174 = tpu.matmul %171, %173, %cst_89 {dimension_numbers = #tpu.dot_dimension_numbers<[1], [0], [0], [1], [0, 0, 1, 1], [], []>} : vector<8x8xbf16>, vector<8x8xbf16>, vector<8x8xf32> -> vector<8x8xf32>
    %175 = arith.addf %167, %174 : vector<8x8xf32>
    %176 = arith.truncf %145 : vector<8x16xf32> to vector<8x16xbf16>
    %c2_90 = arith.constant 2 : index
    %c0_91 = arith.constant 0 : index
    %c0_92 = arith.constant 0 : index
    %177 = vector.load %arg8[%c2_90, %c0_91, %c0_92] : memref<3x16x8xbf16, #tpu.memory_space<vmem>>, vector<1x16x8xbf16>
    %178 = vector.shape_cast %177 : vector<1x16x8xbf16> to vector<16x8xbf16>
    %cst_93 = arith.constant dense<0.000000e+00> : vector<8x8xf32>
    %179 = tpu.matmul %176, %178, %cst_93 {dimension_numbers = #tpu.dot_dimension_numbers<[1], [0], [0], [1], [0, 0, 1, 1], [], []>} : vector<8x16xbf16>, vector<16x8xbf16>, vector<8x8xf32> -> vector<8x8xf32>
    %180 = arith.addf %175, %179 : vector<8x8xf32>
    %181 = vector.extract_strided_slice %145 {offsets = [0, 8], sizes = [8, 8], strides = [1, 1]} : vector<8x16xf32> to vector<8x8xf32>
    %182 = arith.truncf %181 : vector<8x8xf32> to vector<8x8xbf16>
    %cst_94 = arith.constant dense<0.000000e+00> : vector<8x8xf32>
    %183 = tpu.matmul %40, %182, %cst_94 {dimension_numbers = #tpu.dot_dimension_numbers<[1], [0], [0], [1], [0, 0, 1, 1], [], []>} : vector<8x8xbf16>, vector<8x8xbf16>, vector<8x8xf32> -> vector<8x8xf32>
    %184 = arith.truncf %183 : vector<8x8xf32> to vector<8x8xbf16>
    %c2_95 = arith.constant 2 : index
    %c0_96 = arith.constant 0 : index
    %c0_97 = arith.constant 0 : index
    %185 = vector.load %arg9[%c2_95, %c0_96, %c0_97] : memref<3x8x8xbf16, #tpu.memory_space<vmem>>, vector<1x8x8xbf16>
    %186 = vector.shape_cast %185 : vector<1x8x8xbf16> to vector<8x8xbf16>
    %cst_98 = arith.constant dense<0.000000e+00> : vector<8x8xf32>
    %187 = tpu.matmul %184, %186, %cst_98 {dimension_numbers = #tpu.dot_dimension_numbers<[1], [0], [0], [1], [0, 0, 1, 1], [], []>} : vector<8x8xbf16>, vector<8x8xbf16>, vector<8x8xf32> -> vector<8x8xf32>
    %188 = arith.addf %180, %187 : vector<8x8xf32>
    %189 = arith.negf %188 : vector<8x8xf32>
    %190 = math.exp %189 : vector<8x8xf32>
    %cst_99 = arith.constant 1.000000e+00 : f32
    %191 = vector.broadcast %cst_99 : f32 to vector<8x8xf32>
    %192 = arith.addf %191, %190 : vector<8x8xf32>
    %193 = arith.divf %191, %192 : vector<8x8xf32>
    %194 = arith.mulf %188, %193 : vector<8x8xf32>
    %c0_100 = arith.constant 0 : index
    %c8_101 = arith.constant 8 : index
    %c0_102 = arith.constant 0 : index
    %195 = vector.load %arg12[%c0_100, %c8_101, %c0_102] : memref<1x32x8xf32, #tpu.memory_space<vmem>>, vector<1x8x8xf32>
    %196 = vector.shape_cast %195 : vector<1x8x8xf32> to vector<8x8xf32>
    %197 = vector.shape_cast %194 : vector<8x8xf32> to vector<1x8x8xf32>
    tpu.vector_store %arg12[%c0_100, %c8_101, %c0_102], %197 {strides = array<i32>} : memref<1x32x8xf32, #tpu.memory_space<vmem>>, vector<1x8x8xf32>,
    %198 = vector.extract_strided_slice %1 {offsets = [32, 0], sizes = [8, 8], strides = [1, 1]} : vector<64x8xf32> to vector<8x8xf32>
    %199 = vector.extract_strided_slice %1 {offsets = [40, 0], sizes = [8, 8], strides = [1, 1]} : vector<64x8xf32> to vector<8x8xf32>
    %200 = vector.extract_strided_slice %198 {offsets = [0, 0], sizes = [8, 4], strides = [1, 1]} : vector<8x8xf32> to vector<8x4xf32>
    %201 = vector.extract_strided_slice %198 {offsets = [0, 4], sizes = [8, 4], strides = [1, 1]} : vector<8x8xf32> to vector<8x4xf32>
    %202 = arith.maximumf %200, %201 : vector<8x4xf32>
    %203 = vector.extract_strided_slice %199 {offsets = [0, 0], sizes = [8, 4], strides = [1, 1]} : vector<8x8xf32> to vector<8x4xf32>
    %204 = vector.extract_strided_slice %199 {offsets = [0, 4], sizes = [8, 4], strides = [1, 1]} : vector<8x8xf32> to vector<8x4xf32>
    %205 = arith.maximumf %203, %204 : vector<8x4xf32>
    %206 = arith.maximumf %202, %205 : vector<8x4xf32>
    %207 = arith.truncf %206 : vector<8x4xf32> to vector<8x4xbf16>
    %c0_103 = arith.constant 0 : index
    %c0_104 = arith.constant 0 : index
    %208 = vector.load %arg4[%c0_103, %c0_104] : memref<4x8xbf16, #tpu.memory_space<vmem>>, vector<4x8xbf16>
    %cst_105 = arith.constant dense<0.000000e+00> : vector<8x8xf32>
    %209 = tpu.matmul %207, %208, %cst_105 {dimension_numbers = #tpu.dot_dimension_numbers<[1], [0], [0], [1], [0, 0, 1, 1], [], []>} : vector<8x4xbf16>, vector<4x8xbf16>, vector<8x8xf32> -> vector<8x8xf32>
    %c0_106 = arith.constant 0 : index
    %c0_107 = arith.constant 0 : index
    %210 = vector.load %arg5[%c0_106, %c0_107] : memref<1x8xf32, #tpu.memory_space<vmem>>, vector<1x8xf32>
    %211 = vector.broadcast %210 : vector<1x8xf32> to vector<8x8xf32>
    %212 = arith.addf %209, %211 : vector<8x8xf32>
    %213 = arith.negf %212 : vector<8x8xf32>
    %214 = math.exp %213 : vector<8x8xf32>
    %cst_108 = arith.constant 1.000000e+00 : f32
    %215 = vector.broadcast %cst_108 : f32 to vector<8x8xf32>
    %216 = arith.addf %215, %214 : vector<8x8xf32>
    %217 = arith.divf %215, %216 : vector<8x8xf32>
    %218 = arith.mulf %212, %217 : vector<8x8xf32>
    %c0_109 = arith.constant 0 : index
    %c16 = arith.constant 16 : index
    %c0_110 = arith.constant 0 : index
    %219 = vector.load %arg11[%c0_109, %c16, %c0_110] : memref<1x32x8xf32, #tpu.memory_space<vmem>>, vector<1x8x8xf32>
    %220 = vector.shape_cast %219 : vector<1x8x8xf32> to vector<8x8xf32>
    %221 = vector.shape_cast %218 : vector<8x8xf32> to vector<1x8x8xf32>
    tpu.vector_store %arg11[%c0_109, %c16, %c0_110], %221 {strides = array<i32>} : memref<1x32x8xf32, #tpu.memory_space<vmem>>, vector<1x8x8xf32>,
    %222 = vector.extract_strided_slice %13 {offsets = [24, 0], sizes = [8, 16], strides = [1, 1]} : vector<64x16xf32> to vector<8x16xf32>
    %223 = vector.extract_strided_slice %13 {offsets = [32, 0], sizes = [8, 16], strides = [1, 1]} : vector<64x16xf32> to vector<8x16xf32>
    %224 = vector.extract_strided_slice %13 {offsets = [40, 0], sizes = [8, 16], strides = [1, 1]} : vector<64x16xf32> to vector<8x16xf32>
    %cst_111 = arith.constant 0.000000e+00 : f32
    %225 = vector.broadcast %cst_111 : f32 to vector<8x8xf32>
    %c0_112 = arith.constant 0 : index
    %c0_113 = arith.constant 0 : index
    %226 = vector.load %arg10[%c0_112, %c0_113] : memref<1x8xf32, #tpu.memory_space<vmem>>, vector<1x8xf32>
    %227 = vector.broadcast %226 : vector<1x8xf32> to vector<8x8xf32>
    %228 = arith.addf %225, %227 : vector<8x8xf32>
    %229 = arith.truncf %222 : vector<8x16xf32> to vector<8x16xbf16>
    %c0_114 = arith.constant 0 : index
    %c0_115 = arith.constant 0 : index
    %c0_116 = arith.constant 0 : index
    %230 = vector.load %arg8[%c0_114, %c0_115, %c0_116] : memref<3x16x8xbf16, #tpu.memory_space<vmem>>, vector<1x16x8xbf16>
    %231 = vector.shape_cast %230 : vector<1x16x8xbf16> to vector<16x8xbf16>
    %cst_117 = arith.constant dense<0.000000e+00> : vector<8x8xf32>
    %232 = tpu.matmul %229, %231, %cst_117 {dimension_numbers = #tpu.dot_dimension_numbers<[1], [0], [0], [1], [0, 0, 1, 1], [], []>} : vector<8x16xbf16>, vector<16x8xbf16>, vector<8x8xf32> -> vector<8x8xf32>
    %233 = arith.addf %228, %232 : vector<8x8xf32>
    %234 = vector.extract_strided_slice %222 {offsets = [0, 8], sizes = [8, 8], strides = [1, 1]} : vector<8x16xf32> to vector<8x8xf32>
    %235 = arith.truncf %234 : vector<8x8xf32> to vector<8x8xbf16>
    %cst_118 = arith.constant dense<0.000000e+00> : vector<8x8xf32>
    %236 = tpu.matmul %40, %235, %cst_118 {dimension_numbers = #tpu.dot_dimension_numbers<[1], [0], [0], [1], [0, 0, 1, 1], [], []>} : vector<8x8xbf16>, vector<8x8xbf16>, vector<8x8xf32> -> vector<8x8xf32>
    %237 = arith.truncf %236 : vector<8x8xf32> to vector<8x8xbf16>
    %c0_119 = arith.constant 0 : index
    %c0_120 = arith.constant 0 : index
    %c0_121 = arith.constant 0 : index
    %238 = vector.load %arg9[%c0_119, %c0_120, %c0_121] : memref<3x8x8xbf16, #tpu.memory_space<vmem>>, vector<1x8x8xbf16>
    %239 = vector.shape_cast %238 : vector<1x8x8xbf16> to vector<8x8xbf16>
    %cst_122 = arith.constant dense<0.000000e+00> : vector<8x8xf32>
    %240 = tpu.matmul %237, %239, %cst_122 {dimension_numbers = #tpu.dot_dimension_numbers<[1], [0], [0], [1], [0, 0, 1, 1], [], []>} : vector<8x8xbf16>, vector<8x8xbf16>, vector<8x8xf32> -> vector<8x8xf32>
    %241 = arith.addf %233, %240 : vector<8x8xf32>
    %242 = arith.truncf %223 : vector<8x16xf32> to vector<8x16xbf16>
    %c1_123 = arith.constant 1 : index
    %c0_124 = arith.constant 0 : index
    %c0_125 = arith.constant 0 : index
    %243 = vector.load %arg8[%c1_123, %c0_124, %c0_125] : memref<3x16x8xbf16, #tpu.memory_space<vmem>>, vector<1x16x8xbf16>
    %244 = vector.shape_cast %243 : vector<1x16x8xbf16> to vector<16x8xbf16>
    %cst_126 = arith.constant dense<0.000000e+00> : vector<8x8xf32>
    %245 = tpu.matmul %242, %244, %cst_126 {dimension_numbers = #tpu.dot_dimension_numbers<[1], [0], [0], [1], [0, 0, 1, 1], [], []>} : vector<8x16xbf16>, vector<16x8xbf16>, vector<8x8xf32> -> vector<8x8xf32>
    %246 = arith.addf %241, %245 : vector<8x8xf32>
    %247 = vector.extract_strided_slice %223 {offsets = [0, 8], sizes = [8, 8], strides = [1, 1]} : vector<8x16xf32> to vector<8x8xf32>
    %248 = arith.truncf %247 : vector<8x8xf32> to vector<8x8xbf16>
    %cst_127 = arith.constant dense<0.000000e+00> : vector<8x8xf32>
    %249 = tpu.matmul %40, %248, %cst_127 {dimension_numbers = #tpu.dot_dimension_numbers<[1], [0], [0], [1], [0, 0, 1, 1], [], []>} : vector<8x8xbf16>, vector<8x8xbf16>, vector<8x8xf32> -> vector<8x8xf32>
    %250 = arith.truncf %249 : vector<8x8xf32> to vector<8x8xbf16>
    %c1_128 = arith.constant 1 : index
    %c0_129 = arith.constant 0 : index
    %c0_130 = arith.constant 0 : index
    %251 = vector.load %arg9[%c1_128, %c0_129, %c0_130] : memref<3x8x8xbf16, #tpu.memory_space<vmem>>, vector<1x8x8xbf16>
    %252 = vector.shape_cast %251 : vector<1x8x8xbf16> to vector<8x8xbf16>
    %cst_131 = arith.constant dense<0.000000e+00> : vector<8x8xf32>
    %253 = tpu.matmul %250, %252, %cst_131 {dimension_numbers = #tpu.dot_dimension_numbers<[1], [0], [0], [1], [0, 0, 1, 1], [], []>} : vector<8x8xbf16>, vector<8x8xbf16>, vector<8x8xf32> -> vector<8x8xf32>
    %254 = arith.addf %246, %253 : vector<8x8xf32>
    %255 = arith.truncf %224 : vector<8x16xf32> to vector<8x16xbf16>
    %c2_132 = arith.constant 2 : index
    %c0_133 = arith.constant 0 : index
    %c0_134 = arith.constant 0 : index
    %256 = vector.load %arg8[%c2_132, %c0_133, %c0_134] : memref<3x16x8xbf16, #tpu.memory_space<vmem>>, vector<1x16x8xbf16>
    %257 = vector.shape_cast %256 : vector<1x16x8xbf16> to vector<16x8xbf16>
    %cst_135 = arith.constant dense<0.000000e+00> : vector<8x8xf32>
    %258 = tpu.matmul %255, %257, %cst_135 {dimension_numbers = #tpu.dot_dimension_numbers<[1], [0], [0], [1], [0, 0, 1, 1], [], []>} : vector<8x16xbf16>, vector<16x8xbf16>, vector<8x8xf32> -> vector<8x8xf32>
    %259 = arith.addf %254, %258 : vector<8x8xf32>
    %260 = vector.extract_strided_slice %224 {offsets = [0, 8], sizes = [8, 8], strides = [1, 1]} : vector<8x16xf32> to vector<8x8xf32>
    %261 = arith.truncf %260 : vector<8x8xf32> to vector<8x8xbf16>
    %cst_136 = arith.constant dense<0.000000e+00> : vector<8x8xf32>
    %262 = tpu.matmul %40, %261, %cst_136 {dimension_numbers = #tpu.dot_dimension_numbers<[1], [0], [0], [1], [0, 0, 1, 1], [], []>} : vector<8x8xbf16>, vector<8x8xbf16>, vector<8x8xf32> -> vector<8x8xf32>
    %263 = arith.truncf %262 : vector<8x8xf32> to vector<8x8xbf16>
    %c2_137 = arith.constant 2 : index
    %c0_138 = arith.constant 0 : index
    %c0_139 = arith.constant 0 : index
    %264 = vector.load %arg9[%c2_137, %c0_138, %c0_139] : memref<3x8x8xbf16, #tpu.memory_space<vmem>>, vector<1x8x8xbf16>
    %265 = vector.shape_cast %264 : vector<1x8x8xbf16> to vector<8x8xbf16>
    %cst_140 = arith.constant dense<0.000000e+00> : vector<8x8xf32>
    %266 = tpu.matmul %263, %265, %cst_140 {dimension_numbers = #tpu.dot_dimension_numbers<[1], [0], [0], [1], [0, 0, 1, 1], [], []>} : vector<8x8xbf16>, vector<8x8xbf16>, vector<8x8xf32> -> vector<8x8xf32>
    %267 = arith.addf %259, %266 : vector<8x8xf32>
    %268 = arith.negf %267 : vector<8x8xf32>
    %269 = math.exp %268 : vector<8x8xf32>
    %cst_141 = arith.constant 1.000000e+00 : f32
    %270 = vector.broadcast %cst_141 : f32 to vector<8x8xf32>
    %271 = arith.addf %270, %269 : vector<8x8xf32>
    %272 = arith.divf %270, %271 : vector<8x8xf32>
    %273 = arith.mulf %267, %272 : vector<8x8xf32>
    %c0_142 = arith.constant 0 : index
    %c16_143 = arith.constant 16 : index
    %c0_144 = arith.constant 0 : index
    %274 = vector.load %arg12[%c0_142, %c16_143, %c0_144] : memref<1x32x8xf32, #tpu.memory_space<vmem>>, vector<1x8x8xf32>
    %275 = vector.shape_cast %274 : vector<1x8x8xf32> to vector<8x8xf32>
    %276 = vector.shape_cast %273 : vector<8x8xf32> to vector<1x8x8xf32>
    tpu.vector_store %arg12[%c0_142, %c16_143, %c0_144], %276 {strides = array<i32>} : memref<1x32x8xf32, #tpu.memory_space<vmem>>, vector<1x8x8xf32>,
    %277 = vector.extract_strided_slice %1 {offsets = [48, 0], sizes = [8, 8], strides = [1, 1]} : vector<64x8xf32> to vector<8x8xf32>
    %278 = vector.extract_strided_slice %1 {offsets = [56, 0], sizes = [8, 8], strides = [1, 1]} : vector<64x8xf32> to vector<8x8xf32>
    %279 = vector.extract_strided_slice %277 {offsets = [0, 0], sizes = [8, 4], strides = [1, 1]} : vector<8x8xf32> to vector<8x4xf32>
    %280 = vector.extract_strided_slice %277 {offsets = [0, 4], sizes = [8, 4], strides = [1, 1]} : vector<8x8xf32> to vector<8x4xf32>
    %281 = arith.maximumf %279, %280 : vector<8x4xf32>
    %282 = vector.extract_strided_slice %278 {offsets = [0, 0], sizes = [8, 4], strides = [1, 1]} : vector<8x8xf32> to vector<8x4xf32>
    %283 = vector.extract_strided_slice %278 {offsets = [0, 4], sizes = [8, 4], strides = [1, 1]} : vector<8x8xf32> to vector<8x4xf32>
    %284 = arith.maximumf %282, %283 : vector<8x4xf32>
    %285 = arith.maximumf %281, %284 : vector<8x4xf32>
    %286 = arith.truncf %285 : vector<8x4xf32> to vector<8x4xbf16>
    %c0_145 = arith.constant 0 : index
    %c0_146 = arith.constant 0 : index
    %287 = vector.load %arg4[%c0_145, %c0_146] : memref<4x8xbf16, #tpu.memory_space<vmem>>, vector<4x8xbf16>
    %cst_147 = arith.constant dense<0.000000e+00> : vector<8x8xf32>
    %288 = tpu.matmul %286, %287, %cst_147 {dimension_numbers = #tpu.dot_dimension_numbers<[1], [0], [0], [1], [0, 0, 1, 1], [], []>} : vector<8x4xbf16>, vector<4x8xbf16>, vector<8x8xf32> -> vector<8x8xf32>
    %c0_148 = arith.constant 0 : index
    %c0_149 = arith.constant 0 : index
    %289 = vector.load %arg5[%c0_148, %c0_149] : memref<1x8xf32, #tpu.memory_space<vmem>>, vector<1x8xf32>
    %290 = vector.broadcast %289 : vector<1x8xf32> to vector<8x8xf32>
    %291 = arith.addf %288, %290 : vector<8x8xf32>
    %292 = arith.negf %291 : vector<8x8xf32>
    %293 = math.exp %292 : vector<8x8xf32>
    %cst_150 = arith.constant 1.000000e+00 : f32
    %294 = vector.broadcast %cst_150 : f32 to vector<8x8xf32>
    %295 = arith.addf %294, %293 : vector<8x8xf32>
    %296 = arith.divf %294, %295 : vector<8x8xf32>
    %297 = arith.mulf %291, %296 : vector<8x8xf32>
    %c0_151 = arith.constant 0 : index
    %c24 = arith.constant 24 : index
    %c0_152 = arith.constant 0 : index
    %298 = vector.load %arg11[%c0_151, %c24, %c0_152] : memref<1x32x8xf32, #tpu.memory_space<vmem>>, vector<1x8x8xf32>
    %299 = vector.shape_cast %298 : vector<1x8x8xf32> to vector<8x8xf32>
    %300 = vector.shape_cast %297 : vector<8x8xf32> to vector<1x8x8xf32>
    tpu.vector_store %arg11[%c0_151, %c24, %c0_152], %300 {strides = array<i32>} : memref<1x32x8xf32, #tpu.memory_space<vmem>>, vector<1x8x8xf32>,
    %301 = vector.extract_strided_slice %13 {offsets = [40, 0], sizes = [8, 16], strides = [1, 1]} : vector<64x16xf32> to vector<8x16xf32>
    %302 = vector.extract_strided_slice %13 {offsets = [48, 0], sizes = [8, 16], strides = [1, 1]} : vector<64x16xf32> to vector<8x16xf32>
    %303 = vector.extract_strided_slice %13 {offsets = [56, 0], sizes = [8, 16], strides = [1, 1]} : vector<64x16xf32> to vector<8x16xf32>
    %cst_153 = arith.constant 0.000000e+00 : f32
    %304 = vector.broadcast %cst_153 : f32 to vector<8x8xf32>
    %c0_154 = arith.constant 0 : index
    %c0_155 = arith.constant 0 : index
    %305 = vector.load %arg10[%c0_154, %c0_155] : memref<1x8xf32, #tpu.memory_space<vmem>>, vector<1x8xf32>
    %306 = vector.broadcast %305 : vector<1x8xf32> to vector<8x8xf32>
    %307 = arith.addf %304, %306 : vector<8x8xf32>
    %308 = arith.truncf %301 : vector<8x16xf32> to vector<8x16xbf16>
    %c0_156 = arith.constant 0 : index
    %c0_157 = arith.constant 0 : index
    %c0_158 = arith.constant 0 : index
    %309 = vector.load %arg8[%c0_156, %c0_157, %c0_158] : memref<3x16x8xbf16, #tpu.memory_space<vmem>>, vector<1x16x8xbf16>
    %310 = vector.shape_cast %309 : vector<1x16x8xbf16> to vector<16x8xbf16>
    %cst_159 = arith.constant dense<0.000000e+00> : vector<8x8xf32>
    %311 = tpu.matmul %308, %310, %cst_159 {dimension_numbers = #tpu.dot_dimension_numbers<[1], [0], [0], [1], [0, 0, 1, 1], [], []>} : vector<8x16xbf16>, vector<16x8xbf16>, vector<8x8xf32> -> vector<8x8xf32>
    %312 = arith.addf %307, %311 : vector<8x8xf32>
    %313 = vector.extract_strided_slice %301 {offsets = [0, 8], sizes = [8, 8], strides = [1, 1]} : vector<8x16xf32> to vector<8x8xf32>
    %314 = arith.truncf %313 : vector<8x8xf32> to vector<8x8xbf16>
    %cst_160 = arith.constant dense<0.000000e+00> : vector<8x8xf32>
    %315 = tpu.matmul %40, %314, %cst_160 {dimension_numbers = #tpu.dot_dimension_numbers<[1], [0], [0], [1], [0, 0, 1, 1], [], []>} : vector<8x8xbf16>, vector<8x8xbf16>, vector<8x8xf32> -> vector<8x8xf32>
    %316 = arith.truncf %315 : vector<8x8xf32> to vector<8x8xbf16>
    %c0_161 = arith.constant 0 : index
    %c0_162 = arith.constant 0 : index
    %c0_163 = arith.constant 0 : index
    %317 = vector.load %arg9[%c0_161, %c0_162, %c0_163] : memref<3x8x8xbf16, #tpu.memory_space<vmem>>, vector<1x8x8xbf16>
    %318 = vector.shape_cast %317 : vector<1x8x8xbf16> to vector<8x8xbf16>
    %cst_164 = arith.constant dense<0.000000e+00> : vector<8x8xf32>
    %319 = tpu.matmul %316, %318, %cst_164 {dimension_numbers = #tpu.dot_dimension_numbers<[1], [0], [0], [1], [0, 0, 1, 1], [], []>} : vector<8x8xbf16>, vector<8x8xbf16>, vector<8x8xf32> -> vector<8x8xf32>
    %320 = arith.addf %312, %319 : vector<8x8xf32>
    %321 = arith.truncf %302 : vector<8x16xf32> to vector<8x16xbf16>
    %c1_165 = arith.constant 1 : index
    %c0_166 = arith.constant 0 : index
    %c0_167 = arith.constant 0 : index
    %322 = vector.load %arg8[%c1_165, %c0_166, %c0_167] : memref<3x16x8xbf16, #tpu.memory_space<vmem>>, vector<1x16x8xbf16>
    %323 = vector.shape_cast %322 : vector<1x16x8xbf16> to vector<16x8xbf16>
    %cst_168 = arith.constant dense<0.000000e+00> : vector<8x8xf32>
    %324 = tpu.matmul %321, %323, %cst_168 {dimension_numbers = #tpu.dot_dimension_numbers<[1], [0], [0], [1], [0, 0, 1, 1], [], []>} : vector<8x16xbf16>, vector<16x8xbf16>, vector<8x8xf32> -> vector<8x8xf32>
    %325 = arith.addf %320, %324 : vector<8x8xf32>
    %326 = vector.extract_strided_slice %302 {offsets = [0, 8], sizes = [8, 8], strides = [1, 1]} : vector<8x16xf32> to vector<8x8xf32>
    %327 = arith.truncf %326 : vector<8x8xf32> to vector<8x8xbf16>
    %cst_169 = arith.constant dense<0.000000e+00> : vector<8x8xf32>
    %328 = tpu.matmul %40, %327, %cst_169 {dimension_numbers = #tpu.dot_dimension_numbers<[1], [0], [0], [1], [0, 0, 1, 1], [], []>} : vector<8x8xbf16>, vector<8x8xbf16>, vector<8x8xf32> -> vector<8x8xf32>
    %329 = arith.truncf %328 : vector<8x8xf32> to vector<8x8xbf16>
    %c1_170 = arith.constant 1 : index
    %c0_171 = arith.constant 0 : index
    %c0_172 = arith.constant 0 : index
    %330 = vector.load %arg9[%c1_170, %c0_171, %c0_172] : memref<3x8x8xbf16, #tpu.memory_space<vmem>>, vector<1x8x8xbf16>
    %331 = vector.shape_cast %330 : vector<1x8x8xbf16> to vector<8x8xbf16>
    %cst_173 = arith.constant dense<0.000000e+00> : vector<8x8xf32>
    %332 = tpu.matmul %329, %331, %cst_173 {dimension_numbers = #tpu.dot_dimension_numbers<[1], [0], [0], [1], [0, 0, 1, 1], [], []>} : vector<8x8xbf16>, vector<8x8xbf16>, vector<8x8xf32> -> vector<8x8xf32>
    %333 = arith.addf %325, %332 : vector<8x8xf32>
    %334 = arith.truncf %303 : vector<8x16xf32> to vector<8x16xbf16>
    %c2_174 = arith.constant 2 : index
    %c0_175 = arith.constant 0 : index
    %c0_176 = arith.constant 0 : index
    %335 = vector.load %arg8[%c2_174, %c0_175, %c0_176] : memref<3x16x8xbf16, #tpu.memory_space<vmem>>, vector<1x16x8xbf16>
    %336 = vector.shape_cast %335 : vector<1x16x8xbf16> to vector<16x8xbf16>
    %cst_177 = arith.constant dense<0.000000e+00> : vector<8x8xf32>
    %337 = tpu.matmul %334, %336, %cst_177 {dimension_numbers = #tpu.dot_dimension_numbers<[1], [0], [0], [1], [0, 0, 1, 1], [], []>} : vector<8x16xbf16>, vector<16x8xbf16>, vector<8x8xf32> -> vector<8x8xf32>
    %338 = arith.addf %333, %337 : vector<8x8xf32>
    %339 = vector.extract_strided_slice %303 {offsets = [0, 8], sizes = [8, 8], strides = [1, 1]} : vector<8x16xf32> to vector<8x8xf32>
    %340 = arith.truncf %339 : vector<8x8xf32> to vector<8x8xbf16>
    %cst_178 = arith.constant dense<0.000000e+00> : vector<8x8xf32>
    %341 = tpu.matmul %40, %340, %cst_178 {dimension_numbers = #tpu.dot_dimension_numbers<[1], [0], [0], [1], [0, 0, 1, 1], [], []>} : vector<8x8xbf16>, vector<8x8xbf16>, vector<8x8xf32> -> vector<8x8xf32>
    %342 = arith.truncf %341 : vector<8x8xf32> to vector<8x8xbf16>
    %c2_179 = arith.constant 2 : index
    %c0_180 = arith.constant 0 : index
    %c0_181 = arith.constant 0 : index
    %343 = vector.load %arg9[%c2_179, %c0_180, %c0_181] : memref<3x8x8xbf16, #tpu.memory_space<vmem>>, vector<1x8x8xbf16>
    %344 = vector.shape_cast %343 : vector<1x8x8xbf16> to vector<8x8xbf16>
    %cst_182 = arith.constant dense<0.000000e+00> : vector<8x8xf32>
    %345 = tpu.matmul %342, %344, %cst_182 {dimension_numbers = #tpu.dot_dimension_numbers<[1], [0], [0], [1], [0, 0, 1, 1], [], []>} : vector<8x8xbf16>, vector<8x8xbf16>, vector<8x8xf32> -> vector<8x8xf32>
    %346 = arith.addf %338, %345 : vector<8x8xf32>
    %347 = arith.negf %346 : vector<8x8xf32>
    %348 = math.exp %347 : vector<8x8xf32>
    %cst_183 = arith.constant 1.000000e+00 : f32
    %349 = vector.broadcast %cst_183 : f32 to vector<8x8xf32>
    %350 = arith.addf %349, %348 : vector<8x8xf32>
    %351 = arith.divf %349, %350 : vector<8x8xf32>
    %352 = arith.mulf %346, %351 : vector<8x8xf32>
    %c0_184 = arith.constant 0 : index
    %c24_185 = arith.constant 24 : index
    %c0_186 = arith.constant 0 : index
    %353 = vector.load %arg12[%c0_184, %c24_185, %c0_186] : memref<1x32x8xf32, #tpu.memory_space<vmem>>, vector<1x8x8xf32>
    %354 = vector.shape_cast %353 : vector<1x8x8xf32> to vector<8x8xf32>
    %355 = vector.shape_cast %352 : vector<8x8xf32> to vector<1x8x8xf32>
    tpu.vector_store %arg12[%c0_184, %c24_185, %c0_186], %355 {strides = array<i32>} : memref<1x32x8xf32, #tpu.memory_space<vmem>>, vector<1x8x8xf32>,
    return
  }
  func.func @transform_0(%arg0: i32, %arg1: i32) -> (i32, i32, i32) {
    %c0_i32 = arith.constant 0 : i32
    %c0_i32_0 = arith.constant 0 : i32
    return %arg0, %arg1, %c0_i32 : i32, i32, i32
  }
  func.func @transform_1(%arg0: i32, %arg1: i32) -> (i32, i32, i32) {
    %c2_i32 = arith.constant 2 : i32
    %0 = arith.muli %c2_i32, %arg1 : i32
    %c4_i32 = arith.constant 4 : i32
    %1 = arith.muli %0, %c4_i32 : i32
    %c1_i32 = arith.constant 1 : i32
    %2 = arith.subi %1, %c1_i32 : i32
    %c0_i32 = arith.constant 0 : i32
    %3 = arith.maxsi %2, %c0_i32 : i32
    %c0_i32_0 = arith.constant 0 : i32
    %c0_i32_1 = arith.constant 0 : i32
    return %arg0, %3, %c0_i32_0 : i32, i32, i32
  }
  func.func @transform_2(%arg0: i32, %arg1: i32) -> (i32, i32) {
    %c0_i32 = arith.constant 0 : i32
    %c0_i32_0 = arith.constant 0 : i32
    %c0_i32_1 = arith.constant 0 : i32
    return %c0_i32, %c0_i32_0 : i32, i32
  }
  func.func @transform_3(%arg0: i32, %arg1: i32) -> (i32, i32) {
    %c0_i32 = arith.constant 0 : i32
    %c0_i32_0 = arith.constant 0 : i32
    %c0_i32_1 = arith.constant 0 : i32
    return %c0_i32, %c0_i32_0 : i32, i32
  }
  func.func @transform_4(%arg0: i32, %arg1: i32) -> (i32, i32) {
    %c0_i32 = arith.constant 0 : i32
    %c0_i32_0 = arith.constant 0 : i32
    %c0_i32_1 = arith.constant 0 : i32
    return %c0_i32, %c0_i32_0 : i32, i32
  }
  func.func @transform_5(%arg0: i32, %arg1: i32) -> (i32, i32) {
    %c0_i32 = arith.constant 0 : i32
    %c0_i32_0 = arith.constant 0 : i32
    %c0_i32_1 = arith.constant 0 : i32
    return %c0_i32, %c0_i32_0 : i32, i32
  }
  func.func @transform_6(%arg0: i32, %arg1: i32) -> (i32, i32, i32) {
    %c0_i32 = arith.constant 0 : i32
    %c0_i32_0 = arith.constant 0 : i32
    %c0_i32_1 = arith.constant 0 : i32
    %c0_i32_2 = arith.constant 0 : i32
    return %c0_i32, %c0_i32_0, %c0_i32_1 : i32, i32, i32
  }
  func.func @transform_7(%arg0: i32, %arg1: i32) -> (i32, i32, i32) {
    %c0_i32 = arith.constant 0 : i32
    %c0_i32_0 = arith.constant 0 : i32
    %c0_i32_1 = arith.constant 0 : i32
    %c0_i32_2 = arith.constant 0 : i32
    return %c0_i32, %c0_i32_0, %c0_i32_1 : i32, i32, i32
  }
  func.func @transform_8(%arg0: i32, %arg1: i32) -> (i32, i32) {
    %c0_i32 = arith.constant 0 : i32
    %c0_i32_0 = arith.constant 0 : i32
    %c0_i32_1 = arith.constant 0 : i32
    return %c0_i32, %c0_i32_0 : i32, i32
  }
  func.func @transform_9(%arg0: i32, %arg1: i32) -> (i32, i32, i32) {
    %c0_i32 = arith.constant 0 : i32
    %c0_i32_0 = arith.constant 0 : i32
    return %arg0, %arg1, %c0_i32 : i32, i32, i32
  }
  func.func @transform_10(%arg0: i32, %arg1: i32) -> (i32, i32, i32) {
    %c0_i32 = arith.constant 0 : i32
    %c0_i32_0 = arith.constant 0 : i32
    return %arg0, %arg1, %c0_i32 : i32, i32, i32
  }
}

</mosaic_0001>

<bundles_post_ra>
// kernel: tpu_custom_call.1
= control target key start
LH: loop header
LB: loop body
LE: loop exit
PB: predicated region body
PF: predicated region fallthrough
CT: control target
= control target key end

     0   :  { %s2391_s13 = smov 0   ;;  %s2393_s14 = smov 0   ;;  %s2847_s0 = inlined_call_operand.vmem [shape: f32[2,128,8], index: 0, kind: input, shape index: {}]   ;;  %s2848_s1 = inlined_call_operand.vmem [shape: f32[2,128,8], index: 1, kind: input, shape index: {}]   ;;  %s2849_s2 = inlined_call_operand.vmem [shape: bf16[4,8], index: 2, kind: input, shape index: {}]   ;;  %s2850_s3 = inlined_call_operand.vmem [shape: f32[1,8], index: 3, kind: input, shape index: {}]   ;;  %s2851_s4 = inlined_call_operand.vmem [shape: bf16[8,16], index: 4, kind: input, shape index: {}]   ;;  %s2852_s5 = inlined_call_operand.vmem [shape: f32[1,16], index: 5, kind: input, shape index: {}]   ;;  %s2853_s6 = inlined_call_operand.vmem [shape: bf16[3,16,8], index: 6, kind: input, shape index: {}]   ;;  %s2854_s7 = inlined_call_operand.vmem [shape: bf16[3,8,8], index: 7, kind: input, shape index: {}]   ;;  %s2855_s8 = inlined_call_operand.vmem [shape: f32[1,8], index: 8, kind: input, shape index: {}]   ;;  %s2856_s9 = inlined_call_operand.vmem [shape: f32[2,64,8], index: 9, kind: output, shape index: {0}]   ;;  %s2857_s10 = inlined_call_operand.vmem [shape: f32[2,64,8], index: 10, kind: output, shape index: {1}]  }
   0x1   :  { %s2395_s15 = smov 0   ;;  %s2397_s16 = smov 0  }
   0x2   :  { %s2399_s17 = smov 0  }
   0x3 LB: > { %s30_s18 = sadd.s32 1, %s2323_s15  ;;  %s33_s19 = sadd.s32 1, %s2327_s16  ;;  %s2331_s17 = sphi %s2399_s17, %s21_s17   ;;  %s2327_s16 = sphi %s2397_s16, %s2869_s16   ;;  %s2323_s15 = sphi %s2395_s15, %s2868_s15   ;;  %s2319_s14 = sphi %s2393_s14, %s2867_s14   ;;  %s2315_s13 = sphi %s2391_s13, %s2866_s13  }
   0x4   : > { %p31_p0 = scmp.ge.s32.totalorder %s30_s18, 2  ;;  %p1987_p1 = scmp.ge.s32.totalorder %s2331_s17, 1 }
   0x5   : > { %p369_p2 = scmp.lt.s32.totalorder %s2331_s17, 5 }
   0x6   : > { %s2871_s18 = smov (%p31_p0, %s30_s18), 0  ;;  %s2873_s19 = smov (!%p31_p0, %s33_s19), %s2327_s16 }
   0x7   : > { %p370_p3 = pnand %p1987_p1, %p369_p2  ;;  %p35_p4 = scmp.ge.s32.totalorder %s2873_s19, 2 }
   0x8   : > { %s1988_s22 = sshll.u32 (!%p370_p3), %s2315_s13, 3  ;;  %p437_p5 = scmp.lt.s32.totalorder (!%p370_p3), %s2319_s14, 1 }
   0x9   : > { %s2875_s19 = smov (%p35_p4, %s2873_s19), 0  ;;  %373 = sbr.rel (%p370_p3) target bundleno = 1115 (0x45b), region = 56 }
   0xa   : > { %p439_p6 = scmp.lt.s32.totalorder (!%p370_p3), %s1988_s22, 15  ;;  %s1992_s23 = sadd.s32 (!%p370_p3), 4294967295, %s1988_s22 }
   0xb   : > { %p448_p7 = scmp.gt.s32.totalorder (!%p370_p3), %s1992_s23, 0  ;;  %p1993_p8 = scmp.lt.s32.totalorder (!%p370_p3), %s1992_s23, 15 }
   0xc   : > { %p744_p9 = scmp.eq.s32.totalorder (!%p370_p3), %s2315_s13, 0  ;;  %s2333_s20 = smov (!%p370_p3), 120  }
   0xe   : > { %v495_v0 = vld [vmem:[%s2851_s4] sm:$0xf]  ;;  %vm513_vm0 = vcmask 1043456   ;;  %s2877_s14 = smov (!%p437_p5, %s2319_s14), 1  ;;  %s2879_s22 = smov (!%p439_p6, %s1988_s22), 15  ;;  %vm500_vm1 = vcmask 64512  }
   0xf   : > { %v515_v1 = vsel %vm513_vm0, %v495_v0, 0  ;;  %s1989_s24 = sshll.u32 %s2877_s14, 4  ;;  %s2881_s23 = smov (!%p448_p7, %s1992_s23), 0  ;;  %v2462_v13 = vld [vmem:[%s2852_s5] ss:$0 sm:$0xff]  ;;  %v2142_v35 = vld [vmem:[%s2853_s6 + $0x8] sm:$0xff] }
  0x10   : > { %524 = vmatpush.bf16.msra.mxu0 %v515_v1  ;;  %718 = vmatpush.bf16.msra.mxu1 %v515_v1  ;;  %s442_s25 = sadd.s32 %s1989_s24, %s2879_s22  ;;  %s2883_s23 = smov (!%p1993_p8, %s2881_s23), 15  ;;  %v2141_v23 = vld [vmem:[%s2853_s6] sm:$0xff]  ;;  %vm829_vm14 = vcmask 130048  }
  0x11   : > { %s1990_s26 = sshll.u32 %s442_s25, 3  ;;  %s455_s30 = sadd.s32 %s2883_s23, %s1989_s24  ;;  %v2144_v25 = vld [vmem:[%s2853_s6] sm:$0xff]  ;;  %840 = vmatpush.bf16.msra.mxu3 %v2141_v23 }
  0x12   : > { %s444_s29 = scalar_lea.vmem %s2847_s0, %s1990_s26  ;;  %s1999_s11 = sshll.u32 %s455_s30, 3 }
  0x13   : > { %v2434_v2 = vld [vmem:[%s444_s29] sm:$0xff]  ;;  %v2436_v3 = vld [vmem:[%s444_s29 + $0x8] sm:$0xff]  ;;  %s457_s21 = scalar_lea.vmem %s2848_s1, %s1999_s11  ;;  %v2445_v7 = vld [vmem:[%s444_s29 + $0x10] sm:$0xff]  ;;  %s2001_s11 = sshll.u32 %s2877_s14, 3 }
  0x14   : > { %v491_v4 = vpack.c.bf16 %v2436_v3, %v2434_v2  ;;  %v706_v5 = vld [vmem:[%s457_s21] sm:$0xff]  ;;  %v2447_v8 = vld [vmem:[%s444_s29 + $0x18] sm:$0xff]  ;;  %v2454_v11 = vld [vmem:[%s444_s29 + $0x28] sm:$0xff]  ;;  %1127 = vmatpush.bf16.msrb.mxu0 %v2144_v25  ;;  %s745_s30 = scalar_select %p744_p9, 0.0, 1.0 }
  0x15   : > { %v707_v6 = vpack.c.bf16 %v706_v5, %v706_v5  ;;  %v492_v9 = vpack.c.bf16 %v2447_v8, %v2445_v7  ;;  %v2452_v10 = vld [vmem:[%s444_s29 + $0x20] sm:$0xff]  ;;  %v2464_v14 = vld [vmem:[%s444_s29 + $0x30] sm:$0xff]  ;;  %v2466_v15 = vld [vmem:[%s444_s29 + $0x38] sm:$0xff]  ;;  %911 = vmatpush.bf16.msrb.mxu3 %v2142_v35  ;;  %v2201_v23 = vpack.i.bf16 %v2447_v8, %v2445_v7  ;;  %s2334_s21 = smov 124  }
  0x16   : > { %2006 = vmatmul.msk.bf16.vlgmr.msra.gmra.mxu0 %vm500_vm1, %v491_v4  ;;  %v493_v12 = vpack.c.bf16 %v2454_v11, %v2452_v10  ;;  %v494_v16 = vpack.c.bf16 %v2466_v15, %v2464_v14  ;;  %v746_v0 = vstv %s745_s30  ;;  %s2000_s30 = sshll.u32 %s2315_s13, 2 }
  0x17   : > { %2018 = vmatmul.msk.bf16.vlgmr.msra.gmra.mxu1 %vm500_vm1, %v707_v6  ;;  %2202 = vrot.lane.b32.xlu2 %v2201_v23, %s2334_s21  ;;  %p465_p10 = scmp.lt.s32.totalorder %s2000_s30, 7 }
  0x19   : > { %s2885_s30 = smov (!%p465_p10, %s2000_s30), 7 }
  0x26   : > { %2007 = vmatmul.msk.bf16.gmra.mxu0 %vm500_vm1, %v492_v9 }
  0x36   : > { %2008 = vmatmul.msk.bf16.gmra.mxu0 %vm500_vm1, %v493_v12 }
  0x46   : > { %2009 = vmatmul.msk.bf16.gmra.mxu0 %vm500_vm1, %v494_v16 }
  0x93   : > { %v526_v17 = vpop.f32.mrf.mxu0 }
  0x94   : > { %v2472_v18 = vadd.f32 %v2462_v13, %v526_v17  ;;  %v720_v20 = vpop.f32.mrf.mxu1  ;;  %v2143_v17 = vld [vmem:[%s2853_s6 + $0x10] sm:$0xff] }
  0x95   : > { %v2476_v21 = vadd.f32 %v2462_v13, %v720_v20 }
  0x96   : > { %v2010_v19 = vmul.f32 -1.442695, %v2472_v18 }
  0x97   : > { %v2019_v26 = vmul.f32 -1.442695, %v2476_v21 }
  0x98   : > { %2225 = vpow2.f32 %v2010_v19 }
  0x99   : > { %2227 = vpow2.f32 %v2019_v26 }
  0x9b   : > { %v528_v22 = vpop.f32.mrf.mxu0 }
  0x9c   : > { %v2482_v24 = vadd.f32 %v2462_v13, %v528_v22  ;;  %v722_v30 = vpop.f32.mrf.mxu1 }
  0x9e   : > { %v2226_v27 = vpop.eup %2225  ;;  %v2011_v28 = vmul.f32 -1.442695, %v2482_v24 }
  0x9f   : > { %v570_v29 = vadd.f32 1.0, %v2226_v27  ;;  %v2228_v31 = vpop.eup %2227 }
  0xa0   : > { %2229 = vpow2.f32 %v2011_v28  ;;  %v727_v33 = vadd.f32 1.0, %v2228_v31 }
  0xa1   : > { %2231 = vrcp.f32 %v570_v29  ;;  %vm583_vm5 = vweird.f32 %v570_v29  ;;  %v589_v55 = vand.u32 2147483648, %v570_v29  ;;  %v587_v59 = vand.u32 2147483647, %v570_v29 }
  0xa2   : > { %2233 = vrcp.f32 %v727_v33  ;;  %v739_v44 = vand.u32 2147483648, %v727_v33  ;;  %v737_v50 = vand.u32 2147483647, %v727_v33  ;;  %vm733_vm7 = vweird.f32 %v727_v33 }
  0xa3   : > { %v590_v5 = vor.u32 1.1754944e-38, %v589_v55  ;;  %vm588_vm13 = vcmp.eq.f32.partialorder %v587_v59, 8.507059e+37 }
  0xa4   : > { %v740_v56 = vor.u32 1.1754944e-38, %v739_v44  ;;  %vm738_vm11 = vcmp.eq.f32.partialorder %v737_v50, 8.507059e+37 }
  0xa6   : > { %v2230_v32 = vpop.eup %2229 }
  0xa7   : > { %v571_v34 = vadd.f32 1.0, %v2230_v32  ;;  %v2232_v36 = vpop.eup %2231 }
  0xa8   : > { %v579_v37 = vmul.f32 %v2232_v36, %v570_v29  ;;  %v2234_v38 = vpop.eup %2233  ;;  %vm584_vm6 = vweird.f32 %v2232_v36  ;;  %v2196_v29 = vpack.i.bf16 %v2436_v3, %v2434_v2 }
  0xa9   : > { %2235 = vrcp.f32 %v571_v34  ;;  %v729_v41 = vmul.f32 %v2234_v38, %v727_v33  ;;  %v604_v45 = vand.u32 2147483648, %v571_v34  ;;  %vm598_vm2 = vweird.f32 %v571_v34  ;;  %vm2500_vm12 = vmor %vm583_vm5, %vm584_vm6 }
  0xaa   : > { %v580_v40 = vsub.f32 1.0, %v579_v37  ;;  %v602_v47 = vand.u32 2147483647, %v571_v34  ;;  %vm734_vm4 = vweird.f32 %v2234_v38 }
  0xab   : > { %v730_v43 = vsub.f32 1.0, %v729_v41  ;;  %v605_v54 = vor.u32 1.1754944e-38, %v604_v45  ;;  %vm735_vm9 = vmor %vm733_vm7, %vm734_vm4 }
  0xac   : > { %v581_v48 = vmul.f32 %v2232_v36, %v580_v40  ;;  %vm603_vm10 = vcmp.eq.f32.partialorder %v602_v47, 8.507059e+37 }
  0xad   : > { %v731_v49 = vmul.f32 %v2234_v38, %v730_v43 }
  0xae   : > { %v582_v58 = vadd.f32 %v2232_v36, %v581_v48 }
  0xaf   : > { %v2236_v39 = vpop.eup %2235  ;;  %v732_v52 = vadd.f32 %v2234_v38, %v731_v49 }
  0xb0   : > { %v594_v42 = vmul.f32 %v2236_v39, %v571_v34  ;;  %vm599_vm3 = vweird.f32 %v2236_v39  ;;  %v586_v9 = vsel %vm2500_vm12, %v2232_v36, %v582_v58 }
  0xb1   : > { %vm2495_vm8 = vmor %vm598_vm2, %vm599_vm3  ;;  %v736_v60 = vsel %vm735_vm9, %v2234_v38, %v732_v52  ;;  %v591_v20 = vsel %vm588_vm13, %v590_v5, %v586_v9 }
  0xb2   : > { %v595_v46 = vsub.f32 1.0, %v594_v42  ;;  %v741_v62 = vsel %vm738_vm11, %v740_v56, %v736_v60 }
  0xb3   : > { %v743_v1 = vmul.f32 %v741_v62, %v2476_v21  ;;  %v531_v21 = vpop.f32.mrf.mxu0 }
  0xb4   : > { %v596_v51 = vmul.f32 %v2236_v39, %v595_v46  ;;  %v532_v22 = vadd.f32 %v2462_v13, %v531_v21 }
  0xb5   : > { %v747_v12 = vmul.f32 %v746_v0, %v743_v1 }
  0xb6   : > { %v597_v57 = vadd.f32 %v2236_v39, %v596_v51  ;;  %v2012_v25 = vmul.f32 -1.442695, %v532_v22 }
  0xb7   : > { %v820_v19 = vpack.c.bf16 %v747_v12, %v747_v12 }
  0xb8   : > { %v601_v63 = vsel %vm2495_vm8, %v2236_v39, %v597_v57  ;;  %2237 = vpow2.f32 %v2012_v25 }
  0xb9   : > { %v606_v4 = vsel %vm603_vm10, %v605_v54, %v601_v63  ;;  %848 = vrot.lane.b32.xlu0 %v820_v19, %s2333_s20  ;;  %2026 = vmatmul.msk.bf16.vlgmr.msra.gmra.mxu3 %vm829_vm14, %v820_v19 }
  0xba   : > { %v699_v6 = vmul.f32 %v606_v4, %v2482_v24  ;;  %980 = vmatpush.bf16.msra.mxu3 %v2143_v17  ;;  %v698_v24 = vmul.f32 %v591_v20, %v2472_v18 }
  0xbb   : > { %v533_v27 = vpop.f32.mrf.mxu0 }
  0xbc   : > { %v960_v16 = vpack.c.bf16 %v699_v6, %v699_v6  ;;  %v891_v26 = vpack.c.bf16 %v698_v24, %v698_v24  ;;  %v534_v28 = vadd.f32 %v2462_v13, %v533_v27 }
  0xbe   : > { %988 = vrot.lane.b32.xlu1 %v960_v16, %s2333_s20  ;;  %2056 = vmatmul.msk.bf16.vlgmr.msrb.gmra.mxu0 %vm829_vm14, %v960_v16  ;;  %v2238_v30 = vpop.eup %2237  ;;  %v2013_v31 = vmul.f32 -1.442695, %v534_v28 }
  0xbf   : > { %v572_v32 = vadd.f32 1.0, %v2238_v30 }
  0xc0   : > { %2239 = vpow2.f32 %v2013_v31 }
  0xc1   : > { %919 = vrot.lane.b32.xlu0 %v891_v26, %s2333_s20  ;;  %2241 = vrcp.f32 %v572_v32  ;;  %v619_v36 = vand.u32 2147483648, %v572_v32  ;;  %vm613_vm15 = vweird.f32 %v572_v32  ;;  %v617_v38 = vand.u32 2147483647, %v572_v32 }
  0xc3   : > { %v620_v40 = vor.u32 1.1754944e-38, %v619_v36  ;;  %vm618_vm4 = vcmp.eq.f32.partialorder %v617_v38, 8.507059e+37  ;;  %v536_v58 = vpop.f32.mrf.mxu0 }
  0xc4   : > { %v537_v59 = vadd.f32 %v2462_v13, %v536_v58 }
  0xc6   : > { %2197 = vrot.lane.b32.xlu1 %v2196_v29, %s2334_s21  ;;  %v2240_v18 = vpop.eup %2239  ;;  %v2014_v60 = vmul.f32 -1.442695, %v537_v59 }
  0xc7   : > { %v2242_v33 = vpop.eup %2241  ;;  %v573_v34 = vadd.f32 1.0, %v2240_v18  ;;  %v748_v18 = vlaneseq }
  0xc8   : > { %v609_v35 = vmul.f32 %v2242_v33, %v572_v32  ;;  %vm614_vm2 = vweird.f32 %v2242_v33 }
  0xc9   : > { %2035 = vmatmul.msk.bf16.vlgmr.msrb.gmra.mxu3 %vm829_vm14, %v891_v26  ;;  %2243 = vrcp.f32 %v573_v34  ;;  %vm615_vm3 = vmor %vm613_vm15, %vm614_vm2  ;;  %vm628_vm5 = vweird.f32 %v573_v34  ;;  %v634_v46 = vand.u32 2147483648, %v573_v34  ;;  %v632_v49 = vand.u32 2147483647, %v573_v34 }
  0xca   : > { %v610_v37 = vsub.f32 1.0, %v609_v35  ;;  %2245 = vpow2.f32 %v2014_v60  ;;  %v2203_v60 = vpop.permute.xlu2 %2202 }
  0xcb   : > { %v635_v52 = vor.u32 1.1754944e-38, %v634_v46  ;;  %vm633_vm8 = vcmp.eq.f32.partialorder %v632_v49, 8.507059e+37  ;;  %v538_v61 = vpop.f32.mrf.mxu0 }
  0xcc   : > { %v611_v39 = vmul.f32 %v2242_v33, %v610_v37  ;;  %v539_v62 = vadd.f32 %v2462_v13, %v538_v61 }
  0xce   : > { %v612_v41 = vadd.f32 %v2242_v33, %v611_v39  ;;  %v2015_v0 = vmul.f32 -1.442695, %v539_v62  ;;  %v751_v39 = vand.u32 127, %v748_v18 }
  0xcf   : > { %v2244_v42 = vpop.eup %2243 }
  0xd0   : > { %v616_v43 = vsel %vm615_vm3, %v2242_v33, %v612_v41  ;;  %v624_v44 = vmul.f32 %v2244_v42, %v573_v34  ;;  %vm629_vm6 = vweird.f32 %v2244_v42  ;;  %v2246_v63 = vpop.eup %2245  ;;  %2247 = vpow2.f32 %v2015_v0 }
  0xd1   : > { %v621_v45 = vsel %vm618_vm4, %v620_v40, %v616_v43  ;;  %vm630_vm7 = vmor %vm628_vm5, %vm629_vm6  ;;  %v574_v1 = vadd.f32 1.0, %v2246_v63  ;;  %v2205_v63 = vunpack.i.h.bf16 %v2203_v60  ;;  %v2204_v0 = vunpack.i.l.bf16 %v2203_v60 }
  0xd2   : > { %v700_v47 = vmul.f32 %v621_v45, %v532_v22  ;;  %v625_v48 = vsub.f32 1.0, %v624_v44 }
  0xd3   : > { %2249 = vrcp.f32 %v574_v1  ;;  %v541_v4 = vpop.f32.mrf.mxu0  ;;  %v649_v19 = vand.u32 2147483648, %v574_v1  ;;  %vm643_vm9 = vweird.f32 %v574_v1  ;;  %v647_v21 = vand.u32 2147483647, %v574_v1 }
  0xd4   : > { %v2529_v50 = vpack.c.bf16 %v700_v47, %v700_v47  ;;  %v626_v51 = vmul.f32 %v2244_v42, %v625_v48  ;;  %v2540_v5 = vadd.f32 %v2462_v13, %v541_v4  ;;  %v749_v47 = vshrl.u32 %v748_v18, 7 }
  0xd5   : > { %v650_v25 = vor.u32 1.1754944e-38, %v649_v19  ;;  %vm648_vm12 = vcmp.eq.f32.partialorder %v647_v21, 8.507059e+37  ;;  %v752_v48 = vadd.s32 1, %v751_v39  ;;  %v2335_v4 = vmov 0.0  }
  0xd6   : > { %1179 = vrot.lane.b32.xlu2 %v2529_v50, %s2333_s20  ;;  %v627_v53 = vadd.f32 %v2244_v42, %v626_v51  ;;  %v2248_v6 = vpop.eup %2247  ;;  %v2016_v9 = vmul.f32 -1.442695, %v2540_v5  ;;  %v1054_v19 = vmax.f32 %v2445_v7, %v2204_v0  ;;  %v1062_v7 = vld [vmem:[%s2849_s2] sm:$0x3]  ;;  %v2047_v0 = vld [vmem:[%s2854_s7 + $0x8] sm:$0xf] }
  0xd8   : > { %v631_v54 = vsel %vm630_vm7, %v2244_v42, %v627_v53  ;;  %2251 = vpow2.f32 %v2016_v9  ;;  %vm753_vm7 = vcmp.eq.s32.totalorder %v749_v47, %v752_v48 }
  0xd9   : > { %2045 = vmatmul.msk.bf16.vlgmr.msra.gmra.mxu3 %vm829_vm14, %v960_v16  ;;  %v636_v55 = vsel %vm633_vm8, %v635_v52, %v631_v54  ;;  %v2250_v12 = vpop.eup %2249  ;;  %v575_v16 = vadd.f32 1.0, %v2248_v6  ;;  %v754_v6 = vsel %vm753_vm7, 1.0, %v2335_v4 }
  0xda   : > { %v701_v56 = vmul.f32 %v636_v55, %v534_v28  ;;  %v639_v17 = vmul.f32 %v2250_v12, %v574_v1  ;;  %vm644_vm10 = vweird.f32 %v2250_v12 }
  0xdb   : > { %2253 = vrcp.f32 %v575_v16  ;;  %v543_v22 = vpop.f32.mrf.mxu0  ;;  %vm645_vm11 = vmor %vm643_vm9, %vm644_vm10  ;;  %vm658_vm13 = vweird.f32 %v575_v16  ;;  %v664_v34 = vand.u32 2147483648, %v575_v16  ;;  %v662_v36 = vand.u32 2147483647, %v575_v16 }
  0xdc   : > { %v2533_v57 = vpack.c.bf16 %v701_v56, %v701_v56  ;;  %v640_v20 = vsub.f32 1.0, %v639_v17  ;;  %v2544_v24 = vadd.f32 %v2462_v13, %v543_v22 }
  0xdd   : > { %v665_v40 = vor.u32 1.1754944e-38, %v664_v34  ;;  %vm663_vm3 = vcmp.eq.f32.partialorder %v662_v36, 8.507059e+37 }
  0xde   : > { %1246 = vrot.lane.b32.xlu0 %v2533_v57, %s2333_s20  ;;  %v641_v23 = vmul.f32 %v2250_v12, %v640_v20  ;;  %v2252_v26 = vpop.eup %2251  ;;  %v2017_v28 = vmul.f32 -1.442695, %v2544_v24 }
  0xdf   : > { %v576_v30 = vadd.f32 1.0, %v2252_v26 }
  0xe0   : > { %v642_v27 = vadd.f32 %v2250_v12, %v641_v23  ;;  %2255 = vpow2.f32 %v2017_v28 }
  0xe1   : > { %v2254_v29 = vpop.eup %2253  ;;  %2257 = vrcp.f32 %v576_v30  ;;  %vm673_vm4 = vweird.f32 %v576_v30  ;;  %v679_v51 = vand.u32 2147483648, %v576_v30  ;;  %v677_v54 = vand.u32 2147483647, %v576_v30 }
  0xe2   : > { %v646_v31 = vsel %vm645_vm11, %v2250_v12, %v642_v27  ;;  %v654_v32 = vmul.f32 %v2254_v29, %v575_v16  ;;  %vm659_vm15 = vweird.f32 %v2254_v29  ;;  %v1059_v12 = vmax.f32 %v2447_v8, %v2205_v63 }
  0xe3   : > { %v651_v33 = vsel %vm648_vm12, %v650_v25, %v646_v31  ;;  %vm660_vm2 = vmor %vm658_vm13, %vm659_vm15  ;;  %vm678_vm8 = vcmp.eq.f32.partialorder %v677_v54, 8.507059e+37  ;;  %vm777_vm12 = vcmask 1041408   ;;  %vm773_vm15 = vcmask 31744  }
  0xe4   : > { %v702_v35 = vmul.f32 %v651_v33, %v537_v59  ;;  %v655_v13 = vsub.f32 1.0, %v654_v32  ;;  %v680_v59 = vor.u32 1.1754944e-38, %v679_v51  ;;  %v1060_v23 = vmax.f32 %v1054_v19, %v1059_v12  ;;  %v2219_v12 = vld [vmem:[%s2850_s3] ss:$0 sm:$0xff] }
  0xe5   : > { %v1071_v31 = vsel %vm777_vm12, %v1062_v7, 0  ;;  %v2066_v7 = vld [vmem:[%s2854_s7 + $0x4] sm:$0xf] }
  0xe6   : > { %v2547_v37 = vpack.c.bf16 %v702_v35, %v702_v35  ;;  %v656_v38 = vmul.f32 %v2254_v29, %v655_v13  ;;  %v2256_v41 = vpop.eup %2255  ;;  %1080 = vmatpush.bf16.msrb.mxu3 %v1071_v31 }
  0xe7   : > { %v2258_v43 = vpop.eup %2257  ;;  %v577_v44 = vadd.f32 1.0, %v2256_v41 }
  0xe8   : > { %v657_v42 = vadd.f32 %v2254_v29, %v656_v38  ;;  %1436 = vrot.lane.b32.xlu2 %v2547_v37, %s2333_s20  ;;  %v669_v46 = vmul.f32 %v2258_v43, %v576_v30  ;;  %vm674_vm5 = vweird.f32 %v2258_v43  ;;  %v1061_v30 = vpack.c.bf16 %v1060_v23, %v1060_v23 }
  0xe9   : > { %2259 = vrcp.f32 %v577_v44  ;;  %vm2553_vm6 = vmor %vm673_vm4, %vm674_vm5  ;;  %vm688_vm9 = vweird.f32 %v577_v44  ;;  %v694_v17 = vand.u32 2147483648, %v577_v44  ;;  %v692_v22 = vand.u32 2147483647, %v577_v44 }
  0xea   : > { %v661_v45 = vsel %vm660_vm2, %v2254_v29, %v657_v42  ;;  %v670_v53 = vsub.f32 1.0, %v669_v46  ;;  %v2567_v29 = vpack.c.bf16 %v754_v6, %v754_v6  ;;  %2050 = vmatmul.msk.bf16.vlgmr.msrb.gmra.mxu3 %vm773_vm15, %v1061_v30  ;;  %v768_v46 = vld [vmem:[%s2849_s2] sm:$0x3] }
  0xeb   : > { %v666_v49 = vsel %vm663_vm3, %v665_v40, %v661_v45  ;;  %v695_v8 = vor.u32 1.1754944e-38, %v694_v17  ;;  %vm693_vm13 = vcmp.eq.f32.partialorder %v692_v22, 8.507059e+37 }
  0xec   : > { %v703_v52 = vmul.f32 %v666_v49, %v539_v62  ;;  %v671_v56 = vmul.f32 %v2258_v43, %v670_v53  ;;  %v779_v49 = vsel %vm777_vm12, %v768_v46, 0 }
  0xed   : > { %788 = vmatpush.bf16.msra.mxu2 %v779_v49 }
  0xee   : > { %v2551_v55 = vpack.c.bf16 %v703_v52, %v703_v52  ;;  %v672_v61 = vadd.f32 %v2258_v43, %v671_v56 }
  0xef   : > { %v2260_v62 = vpop.eup %2259 }
  0xf0   : > { %1503 = vrot.lane.b32.xlu0 %v2551_v55, %s2333_s20  ;;  %v676_v1 = vsel %vm2553_vm6, %v2258_v43, %v672_v61  ;;  %v684_v9 = vmul.f32 %v2260_v62, %v577_v44  ;;  %vm689_vm10 = vweird.f32 %v2260_v62  ;;  %v2206_v44 = vpack.i.bf16 %v2454_v11, %v2452_v10  ;;  %v870_v61 = vld [vmem:[%s2854_s7] sm:$0xf] }
  0xf1   : > { %v681_v16 = vsel %vm678_vm8, %v680_v59, %v676_v1  ;;  %vm690_vm11 = vmor %vm688_vm9, %vm689_vm10 }
  0xf2   : > { %v704_v20 = vmul.f32 %v681_v16, %v2540_v5  ;;  %v685_v21 = vsub.f32 1.0, %v684_v9  ;;  %2207 = vrot.lane.b32.xlu1 %v2206_v44, %s2334_s21  ;;  %v1013_v9 = vsel %vm513_vm0, %v2047_v0, 0 }
  0xf4   : > { %v2564_v25 = vpack.c.bf16 %v704_v20, %v704_v20  ;;  %v686_v27 = vmul.f32 %v2260_v62, %v685_v21  ;;  %v2146_v20 = vld [vmem:[%s2853_s6 + $0x10] sm:$0xff] }
  0xf6   : > { %v687_v5 = vadd.f32 %v2260_v62, %v686_v27  ;;  %1693 = vrot.lane.b32.xlu2 %v2564_v25, %s2333_s20 }
  0xf8   : > { %v691_v32 = vsel %vm690_vm11, %v2260_v62, %v687_v5  ;;  %v1134_v62 = vld [vmem:[%s2854_s7] sm:$0xf]  ;;  %v1203_v5 = vsel %vm513_vm0, %v2066_v7, 0 }
  0xf9   : > { %v696_v18 = vsel %vm693_vm13, %v695_v8, %v691_v32  ;;  %v1136_v4 = vsel %vm513_vm0, %v1134_v62, 0  ;;  %1212 = vmatpush.bf16.msra.mxu0 %v1203_v5 }
  0xfa   : > { %v705_v33 = vmul.f32 %v696_v18, %v2544_v24 }
  0xfc   : > { %v2579_v35 = vpack.c.bf16 %v705_v33, %v705_v33 }
  0xfe   : > { %1760 = vrot.lane.b32.xlu0 %v2579_v35, %s2333_s20  ;;  %s2652_s20 = sadd.s32 %s2001_s11, %s2885_s30 }
  0xff   : > { %s2002_s25 = sshll.u32 %s2652_s20, 3 }
 0x100   : > { %s2681_s28 = scalar_lea.vmem %s2856_s9, %s2002_s25  ;;  %s2751_s23 = scalar_lea.vmem %s2857_s10, %s2002_s25 }
 0x12b   : > { %v849_v26 = vpop.permute.xlu0 %848 }
 0x12c   : > { %v854_v28 = vsel %vm513_vm0, %v849_v26, 0  ;;  %v2145_v26 = vld [vmem:[%s2853_s6 + $0x8] sm:$0xff] }
 0x12d   : > { %863 = vmatpush.bf16.msrb.mxu1 %v854_v28 }
 0x130   : > { %2027 = vmatmul.msk.bf16.vlgmr.msrb.gmra.mxu1 %vm500_vm1, %v2567_v29  ;;  %v989_v34 = vpop.permute.xlu1 %988  ;;  %v1180_v24 = vpop.permute.xlu2 %1179 }
 0x131   : > { %v991_v38 = vsel %vm513_vm0, %v989_v34, 0  ;;  %v1182_v42 = vsel %vm513_vm0, %v1180_v24, 0 }
 0x132   : > { %1191 = vmatpush.bf16.msra.mxu3 %v1182_v42 }
 0x133   : > { %v920_v13 = vpop.permute.xlu0 %919 }
 0x134   : > { %v922_v36 = vsel %vm513_vm0, %v920_v13, 0 }
 0x135   : > { %931 = vmatpush.bf16.msra.mxu1 %v922_v36  ;;  %2065 = vmatmul.msk.bf16.vlgmr.msra.gmra.mxu3 %vm500_vm1, %v2567_v29 }
 0x138   : > { %v2198_v45 = vpop.permute.xlu1 %2197 }
 0x139   : > { %1000 = vmatpush.bf16.msrb.mxu1 %v991_v38  ;;  %v2200_v47 = vunpack.i.h.bf16 %v2198_v45  ;;  %v2199_v48 = vunpack.i.l.bf16 %v2198_v45 }
 0x13b   : > { %v2583_v39 = vpop.f32.mrf.mxu0  ;;  %v765_v51 = vmax.f32 %v2436_v3, %v2200_v47  ;;  %v760_v52 = vmax.f32 %v2434_v2, %v2199_v48  ;;  %v875_v3 = vsel %vm513_vm0, %v870_v61, 0  ;;  %v2037_v2 = vld [vmem:[%s2854_s7 + $0x4] sm:$0xf] }
 0x13c   : > { %v2587_v40 = vpop.f32.mrf.mxu3  ;;  %884 = vmatpush.bf16.msrb.mxu2 %v875_v3  ;;  %v944_v63 = vsel %vm513_vm0, %v2037_v2, 0  ;;  %v2147_v48 = vld [vmem:[%s2853_s6] sm:$0xff] }
 0x13d   : > { %v766_v53 = vmax.f32 %v760_v52, %v765_v51 }
 0x13f   : > { %v767_v54 = vpack.c.bf16 %v766_v53, %v766_v53 }
 0x140   : > { %2036 = vmatmul.msk.bf16.vlgmr.msra.gmra.mxu1 %vm500_vm1, %v2567_v29 }
 0x141   : > { %2020 = vmatmul.msk.bf16.vlgmr.msra.gmra.mxu2 %vm773_vm15, %v767_v54  ;;  %1145 = vmatpush.bf16.msra.mxu1 %v1136_v4  ;;  %v1319_v54 = vld [vmem:[%s2849_s2] sm:$0x3] }
 0x142   : > { %953 = vmatpush.bf16.msra.mxu2 %v944_v63  ;;  %v1328_v2 = vsel %vm777_vm12, %v1319_v54, 0 }
 0x143   : > { %v1131_v41 = vpop.f32.mrf.mxu0  ;;  %1337 = vmatpush.bf16.msrb.mxu0 %v1328_v2 }
 0x144   : > { %v844_v43 = vpop.f32.mrf.mxu3 }
 0x14c   : > { %v2603_v56 = vpop.f32.mrf.mxu3 }
 0x150   : > { %2046 = vmatmul.msk.bf16.vlgmr.msrb.gmra.mxu1 %vm500_vm1, %v2567_v29  ;;  %v1247_v45 = vpop.permute.xlu0 %1246 }
 0x151   : > { %1238 = vmatpush.bf16.msrb.mxu1 %v2146_v20  ;;  %v1249_v53 = vsel %vm513_vm0, %v1247_v45, 0  ;;  %v2076_v45 = vld [vmem:[%s2854_s7 + $0x8] sm:$0xf] }
 0x154   : > { %v915_v58 = vpop.f32.mrf.mxu3 }
 0x155   : > { %v1437_v58 = vpop.permute.xlu2 %1436 }
 0x156   : > { %v1439_v63 = vsel %vm513_vm0, %v1437_v58, 0  ;;  %v2149_v58 = vld [vmem:[%s2853_s6 + $0x10] sm:$0xff] }
 0x15c   : > { %v2608_v59 = vpop.f32.mrf.mxu3 }
 0x164   : > { %v984_v60 = vpop.f32.mrf.mxu3  ;;  %v2208_v31 = vpop.permute.xlu1 %2207 }
 0x165   : > { %v2210_v33 = vunpack.i.h.bf16 %v2208_v31  ;;  %v2209_v34 = vunpack.i.l.bf16 %v2208_v31  ;;  %v2220_v60 = vld [vmem:[%s2850_s3] ss:$0 sm:$0xff] }
 0x167   : > { %v1316_v42 = vmax.f32 %v2454_v11, %v2210_v33  ;;  %v1311_v43 = vmax.f32 %v2452_v10, %v2209_v34 }
 0x169   : > { %v1317_v10 = vmax.f32 %v1311_v43, %v1316_v42 }
 0x16d   : > { %v1082_v16 = vpop.f32.mrf.mxu3 }
 0x16e   : > { %v2630_v19 = vadd.f32 %v2219_v12, %v1082_v16 }
 0x170   : > { %v2051_v21 = vmul.f32 -1.442695, %v2630_v19 }
 0x172   : > { %2261 = vpow2.f32 %v2051_v21 }
 0x175   : > { %v1084_v22 = vpop.f32.mrf.mxu3 }
 0x178   : > { %v2262_v28 = vpop.eup %2261 }
 0x179   : > { %v1089_v8 = vadd.f32 1.0, %v2262_v28 }
 0x17b   : > { %2263 = vrcp.f32 %v1089_v8  ;;  %vm1095_vm2 = vweird.f32 %v1089_v8  ;;  %v1099_v38 = vand.u32 2147483647, %v1089_v8  ;;  %v1101_v24 = vand.u32 2147483648, %v1089_v8 }
 0x17d   : > { %v1102_v11 = vor.u32 1.1754944e-38, %v1101_v24  ;;  %vm1100_vm5 = vcmp.eq.f32.partialorder %v1099_v38, 8.507059e+37 }
 0x181   : > { %v2264_v13 = vpop.eup %2263 }
 0x182   : > { %v1091_v36 = vmul.f32 %v2264_v13, %v1089_v8  ;;  %vm1096_vm3 = vweird.f32 %v2264_v13 }
 0x183   : > { %vm2655_vm4 = vmor %vm1095_vm2, %vm1096_vm3 }
 0x184   : > { %v1092_v41 = vsub.f32 1.0, %v1091_v36 }
 0x186   : > { %v1093_v47 = vmul.f32 %v2264_v13, %v1092_v41 }
 0x188   : > { %v1094_v52 = vadd.f32 %v2264_v13, %v1093_v47  ;;  %v1391_v47 = vld [vmem:[%s2854_s7] sm:$0xf] }
 0x18a   : > { %v1098_v3 = vsel %vm2655_vm4, %v2264_v13, %v1094_v52  ;;  %v2217_v13 = vld [vmem:[%s2855_s8] ss:$0 sm:$0xff] }
 0x18b   : > { %v1103_v0 = vsel %vm1100_vm5, %v1102_v11, %v1098_v3 }
 0x18c   : > { %v1105_v4 = vmul.f32 %v1103_v0, %v2630_v19 }
 0x18e   : > { %1106 = vst.msk [vmem:[%s2681_s28 + $0x8] sm:$0xff] %vm500_vm1, %v1105_v4 }
 0x1ad   : > { %v865_v1 = vpop.f32.mrf.mxu1 }
 0x1ae   : > { %v869_v6 = vpack.c.bf16 %v865_v1, %v865_v1  ;;  %v2211_v1 = vpack.i.bf16 %v2466_v15, %v2464_v14 }
 0x1b0   : > { %2028 = vmatmul.msk.bf16.vlgmr.msrb.gmra.mxu2 %vm500_vm1, %v869_v6  ;;  %v1318_v6 = vpack.c.bf16 %v1317_v10, %v1317_v10  ;;  %2212 = vrot.lane.b32.xlu1 %v2211_v1, %s2334_s21 }
 0x1b1   : > { %1022 = vmatpush.bf16.msrb.mxu2 %v1013_v9 }
 0x1b5   : > { %v867_v17 = vpop.f32.mrf.mxu1 }
 0x1b8   : > { %v1193_v30 = vpop.f32.mrf.mxu3 }
 0x1b9   : > { %v1197_v18 = vpack.c.bf16 %v1193_v30, %v1193_v30 }
 0x1bb   : > { %2067 = vmatmul.msk.bf16.vlgmr.msra.gmra.mxu0 %vm500_vm1, %v1197_v18 }
 0x1bc   : > { %1448 = vmatpush.bf16.msra.mxu0 %v1439_v63 }
 0x1bd   : > { %v933_v23 = vpop.f32.mrf.mxu1 }
 0x1be   : > { %v937_v27 = vpack.c.bf16 %v933_v23, %v933_v23 }
 0x1c0   : > { %2038 = vmatmul.msk.bf16.vlgmr.msra.gmra.mxu2 %vm500_vm1, %v937_v27  ;;  %v1195_v44 = vpop.f32.mrf.mxu3 }
 0x1c1   : > { %1171 = vmatpush.bf16.msra.mxu2 %v2145_v26 }
 0x1c4   : > { %v790_v61 = vpop.f32.mrf.mxu2 }
 0x1c5   : > { %v935_v32 = vpop.f32.mrf.mxu1  ;;  %v791_v62 = vadd.f32 %v2220_v60, %v790_v61  ;;  %v2095_v60 = vld [vmem:[%s2854_s7 + $0x4] sm:$0xf] }
 0x1c6   : > { %v2218_v32 = vld [vmem:[%s2855_s8] ss:$0 sm:$0xff]  ;;  %v1460_v61 = vsel %vm513_vm0, %v2095_v60, 0 }
 0x1c7   : > { %v2021_v9 = vmul.f32 -1.442695, %v791_v62  ;;  %v846_v33 = vadd.f32 %v2218_v32, %v2587_v40 }
 0x1c9   : > { %2265 = vpow2.f32 %v2021_v9 }
 0x1cb   : > { %2079 = vmatmul.msk.bf16.vlgmr.msrb.gmra.mxu0 %vm773_vm15, %v1318_v6 }
 0x1cc   : > { %v792_v16 = vpop.f32.mrf.mxu2 }
 0x1cd   : > { %v1002_v46 = vpop.f32.mrf.mxu1 }
 0x1ce   : > { %v1006_v49 = vpack.c.bf16 %v1002_v46, %v1002_v46  ;;  %v1270_v46 = vsel %vm513_vm0, %v2076_v45, 0 }
 0x1cf   : > { %v2266_v17 = vpop.eup %2265  ;;  %1279 = vmatpush.bf16.msrb.mxu3 %v1270_v46  ;;  %v1504_v46 = vpop.permute.xlu0 %1503 }
 0x1d0   : > { %2048 = vmatmul.msk.bf16.vlgmr.msrb.gmra.mxu2 %vm500_vm1, %v1006_v49  ;;  %2057 = vmatmul.msk.bf16.vlgmr.msra.gmra.mxu1 %vm500_vm1, %v1006_v49  ;;  %v797_v19 = vadd.f32 1.0, %v2266_v17  ;;  %v2222_v49 = vld [vmem:[%s2850_s3] ss:$0 sm:$0xff] }
 0x1d1   : > { %1258 = vmatpush.bf16.msrb.mxu2 %v1249_v53  ;;  %1384 = vmatpush.bf16.msra.mxu1 %v2147_v48 }
 0x1d2   : > { %2267 = vrcp.f32 %v797_v19  ;;  %v809_v22 = vand.u32 2147483648, %v797_v19  ;;  %vm803_vm6 = vweird.f32 %v797_v19  ;;  %v807_v26 = vand.u32 2147483647, %v797_v19 }
 0x1d4   : > { %v810_v28 = vor.u32 1.1754944e-38, %v809_v22  ;;  %vm808_vm9 = vcmp.eq.f32.partialorder %v807_v26, 8.507059e+37 }
 0x1d5   : > { %v1004_v12 = vpop.f32.mrf.mxu1 }
 0x1d8   : > { %v2268_v20 = vpop.eup %2267 }
 0x1d9   : > { %v799_v21 = vmul.f32 %v2268_v20, %v797_v19  ;;  %vm804_vm7 = vweird.f32 %v2268_v20  ;;  %v1576_v19 = vld [vmem:[%s2849_s2] sm:$0x3] }
 0x1da   : > { %vm805_vm8 = vmor %vm803_vm6, %vm804_vm7 }
 0x1db   : > { %2094 = vmatmul.msk.bf16.vlgmr.msra.gmra.mxu0 %vm500_vm1, %v2567_v29  ;;  %v800_v23 = vsub.f32 1.0, %v799_v21 }
 0x1dd   : > { %v801_v27 = vmul.f32 %v2268_v20, %v800_v23  ;;  %v1585_v23 = vsel %vm777_vm12, %v1576_v19, 0 }
 0x1df   : > { %v802_v8 = vadd.f32 %v2268_v20, %v801_v27 }
 0x1e0   : > { %2064 = vmatmul.msk.bf16.vlgmr.msra.gmra.mxu2 %vm829_vm14, %v2529_v50  ;;  %2074 = vmatmul.msk.bf16.vlgmr.msrb.gmra.mxu1 %vm829_vm14, %v2533_v57 }
 0x1e1   : > { %v806_v50 = vsel %vm805_vm8, %v2268_v20, %v802_v8  ;;  %1469 = vmatpush.bf16.msrb.mxu1 %v1460_v61  ;;  %v2221_v61 = vld [vmem:[%s2855_s8] ss:$0 sm:$0xff] }
 0x1e2   : > { %v811_v7 = vsel %vm808_vm9, %v810_v28, %v806_v50 }
 0x1e3   : > { %v813_v5 = vmul.f32 %v811_v7, %v791_v62 }
 0x1e5   : > { %814 = vst.msk [vmem:[%s2681_s28] sm:$0xff] %vm500_vm1, %v813_v5 }
 0x1f0   : > { %2075 = vmatmul.msk.bf16.vlgmr.msrb.gmra.mxu2 %vm500_vm1, %v2567_v29  ;;  %2085 = vmatmul.msk.bf16.vlgmr.msra.gmra.mxu1 %vm829_vm14, %v2533_v57  ;;  %v1133_v57 = vadd.f32 %v2217_v13, %v2583_v39  ;;  %v1393_v39 = vsel %vm513_vm0, %v1391_v47, 0 }
 0x1f1   : > { %1402 = vmatpush.bf16.msra.mxu2 %v1393_v39  ;;  %1594 = vmatpush.bf16.msra.mxu1 %v1585_v23  ;;  %v2150_v39 = vld [vmem:[%s2853_s6] sm:$0xff] }
 0x1f2   : > { %v2124_v23 = vld [vmem:[%s2854_s7 + $0x4] sm:$0xf] }
 0x1f5   : > { %1495 = vmatpush.bf16.msrb.mxu2 %v2149_v58 }
 0x222   : > { %v2213_v17 = vpop.permute.xlu1 %2212 }
 0x223   : > { %v2215_v27 = vunpack.i.h.bf16 %v2213_v17  ;;  %v2214_v28 = vunpack.i.l.bf16 %v2213_v17 }
 0x233   : > { %v886_v30 = vpop.f32.mrf.mxu2 }
 0x234   : > { %v890_v36 = vadd.f32 %v886_v30, %v846_v33 }
 0x236   : > { %v917_v24 = vadd.f32 %v2603_v56, %v890_v36  ;;  %v1573_v36 = vmax.f32 %v2466_v15, %v2215_v27  ;;  %v1717_v27 = vsel %vm513_vm0, %v2124_v23, 0 }
 0x238   : > { %v1214_v34 = vpop.f32.mrf.mxu0 }
 0x23b   : > { %v888_v31 = vpop.f32.mrf.mxu2 }
 0x240   : > { %v1216_v44 = vpop.f32.mrf.mxu0 }
 0x243   : > { %v955_v18 = vpop.f32.mrf.mxu2 }
 0x244   : > { %v959_v42 = vadd.f32 %v955_v18, %v917_v24 }
 0x246   : > { %v986_v40 = vadd.f32 %v2608_v59, %v959_v42  ;;  %v2148_v59 = vld [vmem:[%s2853_s6 + $0x8] sm:$0xff] }
 0x247   : > { %1428 = vmatpush.bf16.msra.mxu3 %v2148_v59 }
 0x248   : > { %v1339_v52 = vpop.f32.mrf.mxu0 }
 0x249   : > { %v2726_v10 = vadd.f32 %v2222_v49, %v1339_v52 }
 0x24b   : > { %v957_v38 = vpop.f32.mrf.mxu2  ;;  %v2080_v53 = vmul.f32 -1.442695, %v2726_v10 }
 0x24c   : > { %v1568_v38 = vmax.f32 %v2464_v14, %v2214_v28 }
 0x24d   : > { %v1147_v41 = vpop.f32.mrf.mxu1 }
 0x24e   : > { %v1151_v43 = vadd.f32 %v1147_v41, %v1133_v57  ;;  %v1574_v45 = vmax.f32 %v1568_v38, %v1573_v36 }
 0x250   : > { %v1341_v63 = vpop.f32.mrf.mxu0  ;;  %v1575_v52 = vpack.c.bf16 %v1574_v45, %v1574_v45 }
 0x253   : > { %v1024_v48 = vpop.f32.mrf.mxu2 }
 0x254   : > { %v2717_v56 = vadd.f32 %v1024_v48, %v986_v40 }
 0x255   : > { %v1149_v51 = vpop.f32.mrf.mxu1 }
 0x256   : > { %v2049_v11 = vmul.f32 -1.442695, %v2717_v56 }
 0x258   : > { %2269 = vpow2.f32 %v2049_v11  ;;  %v1450_v16 = vpop.f32.mrf.mxu0 }
 0x259   : > { %2271 = vpow2.f32 %v2080_v53  ;;  %v1454_v21 = vpack.c.bf16 %v1450_v16, %v1450_v16  ;;  %v1506_v53 = vsel %vm513_vm0, %v1504_v46, 0 }
 0x25b   : > { %v1026_v54 = vpop.f32.mrf.mxu2  ;;  %2096 = vmatmul.msk.bf16.vlgmr.msrb.gmra.mxu1 %vm500_vm1, %v1454_v21 }
 0x25d   : > { %v1240_v3 = vpop.f32.mrf.mxu1 }
 0x25e   : > { %v2270_v2 = vpop.eup %2269 }
 0x25f   : > { %v1032_v0 = vadd.f32 1.0, %v2270_v2  ;;  %v2272_v62 = vpop.eup %2271 }
 0x260   : > { %v1346_v1 = vadd.f32 1.0, %v2272_v62  ;;  %v1452_v24 = vpop.f32.mrf.mxu0 }
 0x261   : > { %2273 = vrcp.f32 %v1032_v0  ;;  %v1042_v7 = vand.u32 2147483647, %v1032_v0  ;;  %v1044_v5 = vand.u32 2147483648, %v1032_v0  ;;  %vm1038_vm13 = vweird.f32 %v1032_v0 }
 0x262   : > { %2275 = vrcp.f32 %v1346_v1  ;;  %vm1352_vm10 = vweird.f32 %v1346_v1  ;;  %v1356_v18 = vand.u32 2147483647, %v1346_v1  ;;  %v1358_v33 = vand.u32 2147483648, %v1346_v1 }
 0x263   : > { %v1173_v4 = vpop.f32.mrf.mxu2  ;;  %v1045_v41 = vor.u32 1.1754944e-38, %v1044_v5  ;;  %vm1043_vm3 = vcmp.eq.f32.partialorder %v1042_v7, 8.507059e+37 }
 0x264   : > { %v1177_v6 = vadd.f32 %v1173_v4, %v1151_v43  ;;  %v1359_v44 = vor.u32 1.1754944e-38, %v1358_v33  ;;  %vm1357_vm5 = vcmp.eq.f32.partialorder %v1356_v18, 8.507059e+37 }
 0x265   : > { %v1242_v9 = vpop.f32.mrf.mxu1 }
 0x266   : > { %v1218_v12 = vadd.f32 %v1214_v34, %v1177_v6  ;;  %v2223_v9 = vld [vmem:[%s2850_s3] ss:$0 sm:$0xff] }
 0x267   : > { %v2274_v20 = vpop.eup %2273 }
 0x268   : > { %v1034_v22 = vmul.f32 %v2274_v20, %v1032_v0  ;;  %v2740_v26 = vadd.f32 %v1240_v3, %v1218_v12  ;;  %v2276_v8 = vpop.eup %2275  ;;  %vm1039_vm11 = vweird.f32 %v2274_v20  ;;  %v1648_v0 = vld [vmem:[%s2854_s7] sm:$0xf]  ;;  %v2151_v12 = vld [vmem:[%s2853_s6 + $0x8] sm:$0xff] }
 0x269   : > { %v1348_v31 = vmul.f32 %v2276_v8, %v1346_v1  ;;  %vm1353_vm12 = vweird.f32 %v2276_v8  ;;  %vm1040_vm2 = vmor %vm1038_vm13, %vm1039_vm11  ;;  %v1650_v1 = vsel %vm513_vm0, %v1648_v0, 0 }
 0x26a   : > { %v1035_v50 = vsub.f32 1.0, %v1034_v22  ;;  %vm1354_vm4 = vmor %vm1352_vm10, %vm1353_vm12 }
 0x26b   : > { %v1175_v30 = vpop.f32.mrf.mxu2  ;;  %v1349_v13 = vsub.f32 1.0, %v1348_v31  ;;  %2108 = vmatmul.msk.bf16.vlgmr.msra.gmra.mxu1 %vm773_vm15, %v1575_v52 }
 0x26c   : > { %v1036_v32 = vmul.f32 %v2274_v20, %v1035_v50 }
 0x26d   : > { %v1386_v34 = vpop.f32.mrf.mxu1  ;;  %v1350_v42 = vmul.f32 %v2276_v8, %v1349_v13 }
 0x26e   : > { %v1037_v57 = vadd.f32 %v2274_v20, %v1036_v32  ;;  %v1390_v2 = vadd.f32 %v2221_v61, %v1386_v34 }
 0x26f   : > { %v1351_v14 = vadd.f32 %v2276_v8, %v1350_v42 }
 0x270   : > { %v1041_v43 = vsel %vm1040_vm2, %v2274_v20, %v1037_v57 }
 0x271   : > { %v1046_v15 = vsel %vm1043_vm3, %v1045_v41, %v1041_v43  ;;  %v1355_v48 = vsel %vm1354_vm4, %v2276_v8, %v1351_v14 }
 0x272   : > { %v1048_v40 = vmul.f32 %v1046_v15, %v2717_v56  ;;  %v1360_v59 = vsel %vm1357_vm5, %v1359_v44, %v1355_v48  ;;  %v1694_v56 = vpop.permute.xlu2 %1693 }
 0x273   : > { %v1260_v47 = vpop.f32.mrf.mxu2  ;;  %v1362_v51 = vmul.f32 %v1360_v59, %v2726_v10  ;;  %v1696_v54 = vsel %vm513_vm0, %v1694_v56, 0 }
 0x274   : > { %1049 = vst.msk [vmem:[%s2751_s23] sm:$0xff] %vm500_vm1, %v1048_v40  ;;  %v1264_v49 = vpack.c.bf16 %v1260_v47, %v1260_v47  ;;  %1705 = vmatpush.bf16.msrb.mxu1 %v1696_v54 }
 0x275   : > { %v1388_v11 = vpop.f32.mrf.mxu1  ;;  %1363 = vst.msk [vmem:[%s2681_s28 + $0x10] sm:$0xff] %vm500_vm1, %v1362_v51 }
 0x276   : > { %2077 = vmatmul.msk.bf16.vlgmr.msrb.gmra.mxu3 %vm500_vm1, %v1264_v49  ;;  %2086 = vmatmul.msk.bf16.vlgmr.msra.gmra.mxu2 %vm500_vm1, %v1264_v49 }
 0x277   : > { %1515 = vmatpush.bf16.msrb.mxu3 %v1506_v53  ;;  %1641 = vmatpush.bf16.msra.mxu2 %v2150_v39  ;;  %v1761_v53 = vpop.permute.xlu0 %1760 }
 0x27b   : > { %v1262_v58 = vpop.f32.mrf.mxu2  ;;  %2123 = vmatmul.msk.bf16.vlgmr.msrb.gmra.mxu1 %vm500_vm1, %v2567_v29 }
 0x286   : > { %2093 = vmatmul.msk.bf16.vlgmr.msra.gmra.mxu3 %vm829_vm14, %v2547_v37  ;;  %2103 = vmatmul.msk.bf16.vlgmr.msrb.gmra.mxu2 %vm829_vm14, %v2551_v55  ;;  %v2105_v37 = vld [vmem:[%s2854_s7 + $0x8] sm:$0xf] }
 0x287   : > { %v1527_v63 = vsel %vm513_vm0, %v2105_v37, 0  ;;  %1659 = vmatpush.bf16.msra.mxu3 %v1650_v1  ;;  %1726 = vmatpush.bf16.msrb.mxu2 %v1717_v27 }
 0x288   : > { %1536 = vmatpush.bf16.msrb.mxu0 %v1527_v63 }
 0x28c   : > { %1685 = vmatpush.bf16.msra.mxu0 %v2151_v12 }
 0x296   : > { %2104 = vmatmul.msk.bf16.vlgmr.msrb.gmra.mxu3 %vm500_vm1, %v2567_v29  ;;  %2114 = vmatmul.msk.bf16.vlgmr.msra.gmra.mxu2 %vm829_vm14, %v2551_v55 }
 0x2d8   : > { %v1471_v10 = vpop.f32.mrf.mxu1 }
 0x2e0   : > { %v1473_v60 = vpop.f32.mrf.mxu1 }
 0x2e8   : > { %v1596_v3 = vpop.f32.mrf.mxu1 }
 0x2e9   : > { %v2795_v17 = vadd.f32 %v2223_v9, %v1596_v3  ;;  %v1763_v3 = vsel %vm513_vm0, %v1761_v53, 0 }
 0x2eb   : > { %v2109_v19 = vmul.f32 -1.442695, %v2795_v17 }
 0x2f0   : > { %v1598_v20 = vpop.f32.mrf.mxu1 }
 0x2f8   : > { %v1707_v7 = vpop.f32.mrf.mxu1 }
 0x2f9   : > { %v1281_v62 = vpop.f32.mrf.mxu3  ;;  %v1404_v55 = vpop.f32.mrf.mxu2  ;;  %v1711_v30 = vpack.c.bf16 %v1707_v7, %v1707_v7 }
 0x2fa   : > { %v1285_v4 = vadd.f32 %v1281_v62, %v2740_v26  ;;  %v1408_v6 = vadd.f32 %v1404_v55, %v1390_v2  ;;  %v2152_v26 = vld [vmem:[%s2853_s6 + $0x10] sm:$0xff]  ;;  %v2134_v62 = vld [vmem:[%s2854_s7 + $0x8] sm:$0xf] }
 0x2fb   : > { %1752 = vmatpush.bf16.msrb.mxu3 %v2152_v26  ;;  %2125 = vmatmul.msk.bf16.vlgmr.msrb.gmra.mxu2 %vm500_vm1, %v1711_v30  ;;  %v1784_v1 = vsel %vm513_vm0, %v2134_v62, 0 }
 0x2fc   : > { %v2078_v16 = vmul.f32 -1.442695, %v1285_v4  ;;  %1793 = vmatpush.bf16.msra.mxu1 %v1784_v1 }
 0x2fe   : > { %2277 = vpow2.f32 %v2078_v16 }
 0x2ff   : > { %2279 = vpow2.f32 %v2109_v19 }
 0x300   : > { %v1709_v38 = vpop.f32.mrf.mxu1 }
 0x301   : > { %v1283_v21 = vpop.f32.mrf.mxu3  ;;  %v1406_v22 = vpop.f32.mrf.mxu2 }
 0x304   : > { %v2278_v28 = vpop.eup %2277 }
 0x305   : > { %v1289_v8 = vadd.f32 1.0, %v2278_v28  ;;  %v2280_v50 = vpop.eup %2279 }
 0x306   : > { %v1603_v5 = vadd.f32 1.0, %v2280_v50 }
 0x307   : > { %2281 = vrcp.f32 %v1289_v8  ;;  %v1301_v41 = vand.u32 2147483648, %v1289_v8  ;;  %v1299_v14 = vand.u32 2147483647, %v1289_v8  ;;  %vm1295_vm8 = vweird.f32 %v1289_v8 }
 0x308   : > { %2283 = vrcp.f32 %v1603_v5  ;;  %v1615_v45 = vand.u32 2147483648, %v1603_v5  ;;  %vm1609_vm6 = vweird.f32 %v1603_v5  ;;  %v1613_v46 = vand.u32 2147483647, %v1603_v5 }
 0x309   : > { %v1430_v31 = vpop.f32.mrf.mxu3  ;;  %v1497_v32 = vpop.f32.mrf.mxu2  ;;  %v1302_v48 = vor.u32 1.1754944e-38, %v1301_v41  ;;  %vm1300_vm10 = vcmp.eq.f32.partialorder %v1299_v14, 8.507059e+37 }
 0x30a   : > { %v1434_v18 = vadd.f32 %v1430_v31, %v1408_v6  ;;  %v1616_v59 = vor.u32 1.1754944e-38, %v1615_v45  ;;  %vm1614_vm12 = vcmp.eq.f32.partialorder %v1613_v46, 8.507059e+37 }
 0x30c   : > { %v1475_v33 = vadd.f32 %v1471_v10, %v1434_v18 }
 0x30d   : > { %v2282_v34 = vpop.eup %2281 }
 0x30e   : > { %v1291_v13 = vmul.f32 %v2282_v34, %v1289_v8  ;;  %v1501_v36 = vadd.f32 %v1497_v32, %v1475_v33  ;;  %v2284_v57 = vpop.eup %2283  ;;  %vm1296_vm15 = vweird.f32 %v2282_v34 }
 0x30f   : > { %v1605_v44 = vmul.f32 %v2284_v57, %v1603_v5  ;;  %vm1610_vm7 = vweird.f32 %v2284_v57  ;;  %vm1297_vm9 = vmor %vm1295_vm8, %vm1296_vm15 }
 0x310   : > { %v1292_v24 = vsub.f32 1.0, %v1291_v13  ;;  %vm1611_vm11 = vmor %vm1609_vm6, %vm1610_vm7 }
 0x311   : > { %v1432_v42 = vpop.f32.mrf.mxu3  ;;  %v1499_v43 = vpop.f32.mrf.mxu2  ;;  %v1606_v40 = vsub.f32 1.0, %v1605_v44 }
 0x312   : > { %v1293_v15 = vmul.f32 %v2282_v34, %v1292_v24 }
 0x313   : > { %v1607_v39 = vmul.f32 %v2284_v57, %v1606_v40 }
 0x314   : > { %v1294_v47 = vadd.f32 %v2282_v34, %v1293_v15 }
 0x315   : > { %v1608_v11 = vadd.f32 %v2284_v57, %v1607_v39 }
 0x316   : > { %v1298_v49 = vsel %vm1297_vm9, %v2282_v34, %v1294_v47 }
 0x317   : > { %v1303_v51 = vsel %vm1300_vm10, %v1302_v48, %v1298_v49  ;;  %v1612_v56 = vsel %vm1611_vm11, %v2284_v57, %v1608_v11 }
 0x318   : > { %v1305_v52 = vmul.f32 %v1303_v51, %v1285_v4  ;;  %v1617_v10 = vsel %vm1614_vm12, %v1616_v59, %v1612_v56  ;;  %v2224_v4 = vld [vmem:[%s2855_s8] ss:$0 sm:$0xff] }
 0x319   : > { %v1517_v54 = vpop.f32.mrf.mxu3  ;;  %v1643_v58 = vpop.f32.mrf.mxu2  ;;  %v1619_v61 = vmul.f32 %v1617_v10, %v2795_v17 }
 0x31a   : > { %1306 = vst.msk [vmem:[%s2751_s23 + $0x8] sm:$0xff] %vm500_vm1, %v1305_v52  ;;  %v1521_v60 = vpack.c.bf16 %v1517_v54, %v1517_v54 }
 0x31b   : > { %1620 = vst.msk [vmem:[%s2681_s28 + $0x18] sm:$0xff] %vm500_vm1, %v1619_v61 }
 0x31c   : > { %2106 = vmatmul.msk.bf16.vlgmr.msrb.gmra.mxu0 %vm500_vm1, %v1521_v60  ;;  %2115 = vmatmul.msk.bf16.vlgmr.msra.gmra.mxu3 %vm500_vm1, %v1521_v60 }
 0x31d   : > { %1772 = vmatpush.bf16.msrb.mxu0 %v1763_v3 }
 0x321   : > { %v1645_v37 = vpop.f32.mrf.mxu2  ;;  %v1519_v2 = vpop.f32.mrf.mxu3 }
 0x32c   : > { %2122 = vmatmul.msk.bf16.vlgmr.msra.gmra.mxu0 %vm829_vm14, %v2564_v25  ;;  %2132 = vmatmul.msk.bf16.vlgmr.msrb.gmra.mxu3 %vm829_vm14, %v2579_v35  ;;  %v1647_v35 = vadd.f32 %v2224_v4, %v1643_v58 }
 0x33c   : > { %2133 = vmatmul.msk.bf16.vlgmr.msrb.gmra.mxu0 %vm500_vm1, %v2567_v29 }
 0x37e   : > { %v1728_v63 = vpop.f32.mrf.mxu2 }
 0x386   : > { %v1730_v0 = vpop.f32.mrf.mxu2 }
 0x399   : > { %v1538_v55 = vpop.f32.mrf.mxu0 }
 0x39a   : > { %v1542_v25 = vadd.f32 %v1538_v55, %v1501_v36 }
 0x39c   : > { %v2107_v6 = vmul.f32 -1.442695, %v1542_v25 }
 0x39e   : > { %2285 = vpow2.f32 %v2107_v6 }
 0x39f   : > { %v1661_v9 = vpop.f32.mrf.mxu3 }
 0x3a0   : > { %v1665_v29 = vadd.f32 %v1661_v9, %v1647_v35 }
 0x3a1   : > { %v1540_v12 = vpop.f32.mrf.mxu0 }
 0x3a4   : > { %v2286_v16 = vpop.eup %2285 }
 0x3a5   : > { %v1546_v17 = vadd.f32 1.0, %v2286_v16 }
 0x3a7   : > { %2287 = vrcp.f32 %v1546_v17  ;;  %v1663_v19 = vpop.f32.mrf.mxu3  ;;  %v1558_v50 = vand.u32 2147483648, %v1546_v17  ;;  %v1556_v30 = vand.u32 2147483647, %v1546_v17  ;;  %vm1552_vm14 = vweird.f32 %v1546_v17 }
 0x3a9   : > { %v1687_v20 = vpop.f32.mrf.mxu0  ;;  %v1559_v32 = vor.u32 1.1754944e-38, %v1558_v50  ;;  %vm1557_vm2 = vcmp.eq.f32.partialorder %v1556_v30, 8.507059e+37 }
 0x3aa   : > { %v1691_v21 = vadd.f32 %v1687_v20, %v1665_v29 }
 0x3ac   : > { %v1732_v22 = vadd.f32 %v1728_v63, %v1691_v21 }
 0x3ad   : > { %v2288_v23 = vpop.eup %2287 }
 0x3ae   : > { %v1548_v26 = vmul.f32 %v2288_v23, %v1546_v17  ;;  %vm1553_vm0 = vweird.f32 %v2288_v23 }
 0x3af   : > { %v1754_v27 = vpop.f32.mrf.mxu3  ;;  %vm1554_vm13 = vmor %vm1552_vm14, %vm1553_vm0 }
 0x3b0   : > { %v1549_v28 = vsub.f32 1.0, %v1548_v26  ;;  %v1758_v8 = vadd.f32 %v1754_v27, %v1732_v22 }
 0x3b1   : > { %v1689_v7 = vpop.f32.mrf.mxu0 }
 0x3b2   : > { %v1550_v5 = vmul.f32 %v2288_v23, %v1549_v28 }
 0x3b4   : > { %v1551_v31 = vadd.f32 %v2288_v23, %v1550_v5 }
 0x3b6   : > { %v1555_v18 = vsel %vm1554_vm13, %v2288_v23, %v1551_v31 }
 0x3b7   : > { %v1560_v33 = vsel %vm1557_vm2, %v1559_v32, %v1555_v18  ;;  %v1756_v34 = vpop.f32.mrf.mxu3 }
 0x3b8   : > { %v1562_v13 = vmul.f32 %v1560_v33, %v1542_v25 }
 0x3b9   : > { %v1774_v36 = vpop.f32.mrf.mxu0 }
 0x3ba   : > { %1563 = vst.msk [vmem:[%s2751_s23 + $0x10] sm:$0xff] %vm500_vm1, %v1562_v13  ;;  %v1778_v38 = vpack.c.bf16 %v1774_v36, %v1774_v36 }
 0x3bc   : > { %2135 = vmatmul.msk.bf16.vlgmr.msra.gmra.mxu1 %vm500_vm1, %v1778_v38 }
 0x3c1   : > { %v1776_v57 = vpop.f32.mrf.mxu0 }
 0x439   : > { %v1795_v24 = vpop.f32.mrf.mxu1 }
 0x43a   : > { %v1799_v41 = vadd.f32 %v1795_v24, %v1758_v8 }
 0x43c   : > { %v2136_v42 = vmul.f32 -1.442695, %v1799_v41 }
 0x43e   : > { %2289 = vpow2.f32 %v2136_v42 }
 0x441   : > { %v1797_v43 = vpop.f32.mrf.mxu1 }
 0x444   : > { %v2290_v44 = vpop.eup %2289 }
 0x445   : > { %v1803_v15 = vadd.f32 1.0, %v2290_v44 }
 0x447   : > { %2291 = vrcp.f32 %v1803_v15  ;;  %v1815_v46 = vand.u32 2147483648, %v1803_v15  ;;  %v1813_v48 = vand.u32 2147483647, %v1803_v15  ;;  %vm1809_vm4 = vweird.f32 %v1803_v15 }
 0x449   : > { %v1816_v49 = vor.u32 1.1754944e-38, %v1815_v46  ;;  %vm1814_vm15 = vcmp.eq.f32.partialorder %v1813_v48, 8.507059e+37 }
 0x44d   : > { %v2292_v14 = vpop.eup %2291 }
 0x44e   : > { %v1805_v45 = vmul.f32 %v2292_v14, %v1803_v15  ;;  %vm1810_vm3 = vweird.f32 %v2292_v14 }
 0x44f   : > { %vm1811_vm5 = vmor %vm1809_vm4, %vm1810_vm3 }
 0x450   : > { %v1806_v40 = vsub.f32 1.0, %v1805_v45 }
 0x452   : > { %v1807_v47 = vmul.f32 %v2292_v14, %v1806_v40 }
 0x454   : > { %v1808_v39 = vadd.f32 %v2292_v14, %v1807_v47 }
 0x456   : > { %v1812_v59 = vsel %vm1811_vm5, %v2292_v14, %v1808_v39 }
 0x457   : > { %v1817_v51 = vsel %vm1814_vm15, %v1816_v49, %v1812_v59 }
 0x458   : > { %v1819_v11 = vmul.f32 %v1817_v51, %v1799_v41 }
 0x45a   : > { %1820 = vst.msk [vmem:[%s2751_s23 + $0x18] sm:$0xff] %vm500_vm1, %v1819_v11 }
 0x45b PF: > { %s21_s17 = sadd.s32 1, %s2331_s17   ;;  %s2866_s13 = smov %s2323_s15 }
 0x45c   : > { %p18_p11 = scmp.ge.s32.totalorder %s21_s17, 6   ;;  %s2867_s14 = smov %s2327_s16 }
 0x45d   : > { %s2868_s15 = smov %s2871_s18  ;;  %s2869_s16 = smov %s2875_s19 }
 0x45e   :  { %20 = sbr.rel (!%p18_p11) target bundleno = 3 (0x3), region = 105 }

</bundles_post_ra>
